<compile_context>
chip_gen: v6e
topology: v6e:2x2x1
jax: 0.10.0
libtpu: 0.0.40
codegen_flags: <defaults>
</compile_context>

<pallas_src>
import functools

import jax
import jax.numpy as jnp
from jax.experimental import pallas as pl
from jax.experimental.pallas import tpu as pltpu


# ------------------------------ Pallas kernel --------------------------------

def _srbw2_kernel(x_ref, w1_ref, b1_ref, w2_ref, b2_ref, w3_ref, b3_ref,
                  wc_ref, bc_ref, par_ref, o_ref, *, H, W):
    """Fused SRBW2 forward for one batch sample.

    Layout: channels in sublanes, flattened H*W in lanes (lane-dense).
    """
    HW = H * W
    bf16 = jnp.bfloat16
    f32 = jnp.float32

    x = x_ref[0]                                               # (Cin, HW) bf16

    # ---- body[0] 1x1 conv + ReLU, body[2] 1x1 conv (MXU, f32 accumulate) ----
    t1 = jnp.dot(w1_ref[...], x, preferred_element_type=f32) + b1_ref[...]
    t1 = jnp.maximum(t1, 0.0).astype(bf16)                     # (C1, HW)
    t2 = jnp.dot(w2_ref[...], t1, preferred_element_type=f32) + b2_ref[...]
    t2b = t2.astype(bf16)                                      # (C2, HW)

    # ---- in-kernel 3x3 taps: shifted lane views + boundary masks ------------
    col = jax.lax.broadcasted_iota(jnp.int32, (1, HW), 1) % W
    mask_l = (col != 0).astype(bf16)                           # tap dw = -1
    mask_r = (col != W - 1).astype(bf16)                       # tap dw = +1
    pad_w = W + 1

    def taps(v):                                               # (C,HW) -> (9C,HW)
        C = v.shape[0]
        z = jnp.zeros((C, pad_w), v.dtype)
        ext = jnp.concatenate([z, v, z], axis=-1)              # (C, HW + 2*pad_w)
        parts = []
        for dh in (-1, 0, 1):
            for dw in (-1, 0, 1):
                d = dh * W + dw
                s = jax.lax.slice_in_dim(ext, pad_w + d, pad_w + d + HW, axis=1)
                if dw == -1:
                    s = s * mask_l
                elif dw == 1:
                    s = s * mask_r
                parts.append(s)
        return jnp.concatenate(parts, axis=0)

    # body[3] 3x3 conv (output channels already permuted by channel_shuffle).
    u = jnp.dot(w3_ref[...], taps(t2b), preferred_element_type=f32) + b3_ref[...]
    # skip path: self.conv 3x3 (x_scale folded into weights/bias).
    skip = jnp.dot(wc_ref[...], taps(x), preferred_element_type=f32) + bc_ref[...]

    # ---- sa_layer: avg-pool gate / per-channel GroupNorm gate (all f32) -----
    par = par_ref[...]                                         # (C2, 8) f32
    cw, cb = par[:, 0:1], par[:, 1:2]
    sw, sb = par[:, 2:3], par[:, 3:4]
    gnw, gnb = par[:, 4:5], par[:, 5:6]
    msk, rsv = par[:, 6:7], par[:, 7:8]

    mean = jnp.mean(u, axis=1, keepdims=True)                  # (C2, 1)
    diff = u - mean
    var = jnp.mean(diff * diff, axis=1, keepdims=True)         # (C2, 1)
    gn = diff * jax.lax.rsqrt(var + 1e-5) * gnw + gnb          # (C2, HW)

    g0 = pl.reciprocal(1.0 + jnp.exp(-(cw * mean + cb)), approx=True)  # (C2, 1)
    g1 = pl.reciprocal(1.0 + jnp.exp(-(sw * gn + sb)), approx=True)    # (C2, HW)
    gate = msk * g0 + (1.0 - msk) * g1

    o_ref[0] = rsv * (u * gate) + skip                         # (C2, HW) f32


# --------------------------------- wrapper ------------------------------------

def srbw2_forward(x_nchw, params):
    B, Cin, H, W = x_nchw.shape
    C1 = params['w1'].shape[0]            # n_feats * 9 // 4
    C2 = params['w2'].shape[0]            # n_feats // 2
    HW = H * W
    f32, bf16 = jnp.float32, jnp.bfloat16

    # ---- weights: (C_out, contraction) rows x lanes ----
    w1m = params['w1'][:, :, 0, 0].astype(f32)                        # (C1, Cin)
    b1m = params['b1'].reshape(C1, 1).astype(f32)
    w2m = params['w2'][:, :, 0, 0].astype(f32)                        # (C2, C1)
    b2m = params['b2'].reshape(C2, 1).astype(f32)
    w3m = params['w3'].transpose(0, 2, 3, 1).reshape(C2, 9 * C2).astype(f32)
    b3m = params['b3'].reshape(C2, 1).astype(f32)
    wcm = params['wc'].transpose(0, 2, 3, 1).reshape(C2, 9 * Cin).astype(f32)
    bcm = params['bc'].reshape(C2, 1).astype(f32)

    # fold x_scale into the skip conv
    xs = params['x_scale'][0]
    wcm = wcm * xs
    bcm = bcm * xs

    # ---- sa_layer per-channel params (vectorized build, no scatter loop) ----
    G = 6
    half = C2 // (2 * G)
    cweight = params['cweight'].reshape(half).astype(f32)
    cbias = params['cbias'].reshape(half).astype(f32)
    sweight = params['sweight'].reshape(half).astype(f32)
    sbias = params['sbias'].reshape(half).astype(f32)
    gn_w = params['gn_w'].reshape(half).astype(f32)
    gn_b = params['gn_b'].reshape(half).astype(f32)

    k = jnp.arange(C2)
    m = k % (2 * half)
    is_c = m < half                       # first half of each group -> avg-pool gate
    idx = jnp.where(is_c, m, m - half)
    cwv = jnp.where(is_c, cweight[idx], 0.0)
    cbv = jnp.where(is_c, cbias[idx], 0.0)
    swv = jnp.where(is_c, 0.0, sweight[idx])
    sbv = jnp.where(is_c, 0.0, sbias[idx])
    gnwv = jnp.where(is_c, 0.0, gn_w[idx])
    gnbv = jnp.where(is_c, 0.0, gn_b[idx])
    maskv = is_c.astype(f32)
    rsv = jnp.full((C2,), 1.0, f32) * params['res_scale'][0]

    # channel_shuffle(groups=2): final channel c <- pre-shuffle channel src(c);
    # fold into conv3 output rows + per-channel sa params.
    src = (k % 2) * (C2 // 2) + k // 2
    w3m = w3m[src, :]
    b3m = b3m[src, :]
    cwv, cbv, swv, sbv, gnwv, gnbv, maskv = (v[src] for v in
                                             (cwv, cbv, swv, sbv, gnwv, gnbv, maskv))
    par = jnp.stack([cwv, cbv, swv, sbv, gnwv, gnbv, maskv, rsv], axis=1)  # (C2, 8)

    # bf16 MXU operands; stats/gates stay f32 inside the kernel.
    w1b, w2b, w3b, wcb = (w.astype(bf16) for w in (w1m, w2m, w3m, wcm))
    xr = x_nchw.reshape(B, Cin, HW).astype(bf16)              # HW in lanes (NCHW!)

    flops = 2 * B * HW * (Cin * C1 + C1 * C2 + 9 * C2 * C2 + 9 * Cin * C2)
    bytes_accessed = (xr.size * 2 + B * C2 * HW * 4 +
                      2 * (w1b.size + w2b.size + w3b.size + wcb.size) +
                      4 * (C1 + 3 * C2 + par.size))
    cost = pl.CostEstimate(flops=flops,
                           transcendentals=2 * B * HW * C2,
                           bytes_accessed=bytes_accessed)

    out = pl.pallas_call(
        functools.partial(_srbw2_kernel, H=H, W=W),
        out_shape=jax.ShapeDtypeStruct((B, C2, HW), f32),
        grid=(B,),
        in_specs=[
            pl.BlockSpec((1, Cin, HW), lambda b: (b, 0, 0)),
            pl.BlockSpec((C1, Cin), lambda b: (0, 0)),
            pl.BlockSpec((C1, 1), lambda b: (0, 0)),
            pl.BlockSpec((C2, C1), lambda b: (0, 0)),
            pl.BlockSpec((C2, 1), lambda b: (0, 0)),
            pl.BlockSpec((C2, 9 * C2), lambda b: (0, 0)),
            pl.BlockSpec((C2, 1), lambda b: (0, 0)),
            pl.BlockSpec((C2, 9 * Cin), lambda b: (0, 0)),
            pl.BlockSpec((C2, 1), lambda b: (0, 0)),
            pl.BlockSpec((C2, 8), lambda b: (0, 0)),
        ],
        out_specs=pl.BlockSpec((1, C2, HW), lambda b: (b, 0, 0)),
        compiler_params=pltpu.CompilerParams(dimension_semantics=("parallel",)),
        cost_estimate=cost,
    )(xr, w1b, b1m, w2b, b2m, w3b, b3m, wcb, bcm, par)

    return out.reshape(B, C2, H, W)                           # already NCHW


# --------------------------- pure-JAX reference -------------------------------

def _ref_srbw2(x, p):
    def conv(a, w, b, pad):
        y = jax.lax.conv_general_dilated(
            a, w, (1, 1), [(pad, pad), (pad, pad)],
            dimension_numbers=('NCHW', 'OIHW', 'NCHW'),
            precision=jax.lax.Precision.HIGHEST)
        return y + b[None, :, None, None]

    t = jax.nn.relu(conv(x, p['w1'], p['b1'], 0))
    t = conv(t, p['w2'], p['b2'], 0)
    t = conv(t, p['w3'], p['b3'], 1)

    Bq, C2, Hq, Wq = t.shape
    G = 6
    half = C2 // (2 * G)
    tr = t.reshape(Bq * G, C2 // G, Hq, Wq)
    x0, x1 = tr[:, :half], tr[:, half:]
    xn = jnp.mean(x0, axis=(2, 3), keepdims=True)
    xn = p['cweight'] * xn + p['cbias']
    xn = x0 * jax.nn.sigmoid(xn)
    mu = jnp.mean(x1, axis=(2, 3), keepdims=True)
    var = jnp.mean((x1 - mu) ** 2, axis=(2, 3), keepdims=True)
    gn = (x1 - mu) / jnp.sqrt(var + 1e-5)
    gn = gn * p['gn_w'][None, :, None, None] + p['gn_b'][None, :, None, None]
    xs = p['sweight'] * gn + p['sbias']
    xs = x1 * jax.nn.sigmoid(xs)
    o = jnp.concatenate([xn, xs], axis=1).reshape(Bq, C2, Hq, Wq)
    o = o.reshape(Bq, 2, C2 // 2, Hq, Wq).transpose(0, 2, 1, 3, 4).reshape(Bq, C2, Hq, Wq)
    skip = conv(x, p['wc'], p['bc'], 1)
    return p['res_scale'][0] * o + p['x_scale'][0] * skip


# ----------------------------------- main --------------------------------------

if __name__ == "__main__":
    n_feats = 24                   # smallest n_feats valid for groups=6
    B, H, W = 2, 16, 16
    C1 = n_feats * 9 // 4          # 54
    C2 = n_feats // 2              # 12
    half = C2 // (2 * 6)           # 1
    f32 = jnp.float32

    key = jax.random.PRNGKey(0)
    ks = jax.random.split(key, 16)
    p = {
        'w1': jax.random.normal(ks[0], (C1, n_feats, 1, 1), f32) * 0.1,
        'b1': jax.random.normal(ks[1], (C1,), f32) * 0.05,
        'w2': jax.random.normal(ks[2], (C2, C1, 1, 1), f32) * 0.1,
        'b2': jax.random.normal(ks[3], (C2,), f32) * 0.05,
        'w3': jax.random.normal(ks[4], (C2, C2, 3, 3), f32) * 0.1,
        'b3': jax.random.normal(ks[5], (C2,), f32) * 0.05,
        'wc': jax.random.normal(ks[6], (C2, n_feats, 3, 3), f32) * 0.05,
        'bc': jax.random.normal(ks[7], (C2,), f32) * 0.05,
        'cweight': jax.random.normal(ks[8], (1, half, 1, 1), f32) * 0.5,
        'cbias': jnp.full((1, half, 1, 1), 0.3, f32),
        'sweight': jax.random.normal(ks[9], (1, half, 1, 1), f32) * 0.5,
        'sbias': jnp.full((1, half, 1, 1), 0.2, f32),
        'gn_w': jax.random.normal(ks[10], (half,), f32) * 0.5 + 1.0,
        'gn_b': jax.random.normal(ks[11], (half,), f32) * 0.1,
        'res_scale': jnp.array([0.8], f32),
        'x_scale': jnp.array([1.2], f32),
    }
    x = jax.random.normal(ks[12], (B, n_feats, H, W), f32)

    y = srbw2_forward(x, p)
    y = jax.block_until_ready(y)
    assert y.shape == (B, C2, H, W)

    y_ref = _ref_srbw2(x, p)
    err = float(jnp.max(jnp.abs(y - y_ref)))
    if not err < 2e-2:
        raise AssertionError(f"kernel/reference mismatch, max abs err = {err}")
    print("KERNEL_OK")
</pallas_src>

<mosaic_0001>
module attributes {stable_mosaic.version = 11 : i64} {
  func.func @_srbw2_kernel(%arg0: i32, %arg1: memref<1x24x256xbf16, #tpu.memory_space<vmem>>, %arg2: memref<54x24xbf16, #tpu.memory_space<vmem>>, %arg3: memref<54x1xf32, #tpu.memory_space<vmem>>, %arg4: memref<12x54xbf16, #tpu.memory_space<vmem>>, %arg5: memref<12x1xf32, #tpu.memory_space<vmem>>, %arg6: memref<12x108xbf16, #tpu.memory_space<vmem>>, %arg7: memref<12x1xf32, #tpu.memory_space<vmem>>, %arg8: memref<12x216xbf16, #tpu.memory_space<vmem>>, %arg9: memref<12x1xf32, #tpu.memory_space<vmem>>, %arg10: memref<12x8xf32, #tpu.memory_space<vmem>>, %arg11: memref<1x12x256xf32, #tpu.memory_space<vmem>>) attributes {dimension_semantics = [#tpu.dimension_semantics<parallel>], iteration_bounds = array<i64: 2>, scalar_prefetch = 0 : i64, scratch_operands = 0 : i64, tpu.core_type = #tpu.core_type<tc>, window_params = [{transform_indices = @transform_0, window_bounds = array<i64: 1, 24, 256>}, {pipeline_mode = #tpu.pipeline_mode<synchronous>, transform_indices = @transform_1, window_bounds = array<i64: 54, 24>}, {pipeline_mode = #tpu.pipeline_mode<synchronous>, transform_indices = @transform_2, window_bounds = array<i64: 54, 1>}, {pipeline_mode = #tpu.pipeline_mode<synchronous>, transform_indices = @transform_3, window_bounds = array<i64: 12, 54>}, {pipeline_mode = #tpu.pipeline_mode<synchronous>, transform_indices = @transform_4, window_bounds = array<i64: 12, 1>}, {pipeline_mode = #tpu.pipeline_mode<synchronous>, transform_indices = @transform_5, window_bounds = array<i64: 12, 108>}, {pipeline_mode = #tpu.pipeline_mode<synchronous>, transform_indices = @transform_6, window_bounds = array<i64: 12, 1>}, {pipeline_mode = #tpu.pipeline_mode<synchronous>, transform_indices = @transform_7, window_bounds = array<i64: 12, 216>}, {pipeline_mode = #tpu.pipeline_mode<synchronous>, transform_indices = @transform_8, window_bounds = array<i64: 12, 1>}, {pipeline_mode = #tpu.pipeline_mode<synchronous>, transform_indices = @transform_9, window_bounds = array<i64: 12, 8>}, {transform_indices = @transform_10, window_bounds = array<i64: 1, 12, 256>}]} {
    %c0 = arith.constant 0 : index
    %c0_0 = arith.constant 0 : index
    %c0_1 = arith.constant 0 : index
    %0 = vector.load %arg1[%c0, %c0_0, %c0_1] : memref<1x24x256xbf16, #tpu.memory_space<vmem>>, vector<1x24x256xbf16>
    %1 = vector.shape_cast %0 : vector<1x24x256xbf16> to vector<24x256xbf16>
    %c0_2 = arith.constant 0 : index
    %c0_3 = arith.constant 0 : index
    %2 = vector.load %arg2[%c0_2, %c0_3] : memref<54x24xbf16, #tpu.memory_space<vmem>>, vector<54x24xbf16>
    %cst = arith.constant dense<0.000000e+00> : vector<54x256xf32>
    %3 = tpu.matmul %2, %1, %cst {dimension_numbers = #tpu.dot_dimension_numbers<[1], [0], [0], [1], [0, 0, 1, 1], [], []>} : vector<54x24xbf16>, vector<24x256xbf16>, vector<54x256xf32> -> vector<54x256xf32>
    %c0_4 = arith.constant 0 : index
    %c0_5 = arith.constant 0 : index
    %4 = vector.load %arg3[%c0_4, %c0_5] : memref<54x1xf32, #tpu.memory_space<vmem>>, vector<54x1xf32>
    %5 = vector.broadcast %4 : vector<54x1xf32> to vector<54x256xf32>
    %6 = arith.addf %3, %5 : vector<54x256xf32>
    %cst_6 = arith.constant 0.000000e+00 : f32
    %7 = vector.broadcast %cst_6 : f32 to vector<54x256xf32>
    %8 = arith.maximumf %6, %7 : vector<54x256xf32>
    %9 = arith.truncf %8 : vector<54x256xf32> to vector<54x256xbf16>
    %c0_7 = arith.constant 0 : index
    %c0_8 = arith.constant 0 : index
    %10 = vector.load %arg4[%c0_7, %c0_8] : memref<12x54xbf16, #tpu.memory_space<vmem>>, vector<12x54xbf16>
    %cst_9 = arith.constant dense<0.000000e+00> : vector<12x256xf32>
    %11 = tpu.matmul %10, %9, %cst_9 {dimension_numbers = #tpu.dot_dimension_numbers<[1], [0], [0], [1], [0, 0, 1, 1], [], []>} : vector<12x54xbf16>, vector<54x256xbf16>, vector<12x256xf32> -> vector<12x256xf32>
    %c0_10 = arith.constant 0 : index
    %c0_11 = arith.constant 0 : index
    %12 = vector.load %arg5[%c0_10, %c0_11] : memref<12x1xf32, #tpu.memory_space<vmem>>, vector<12x1xf32>
    %13 = vector.broadcast %12 : vector<12x1xf32> to vector<12x256xf32>
    %14 = arith.addf %11, %13 : vector<12x256xf32>
    %15 = arith.truncf %14 : vector<12x256xf32> to vector<12x256xbf16>
    %16 = tpu.iota {dimensions = array<i32: 1>} : vector<1x256xi32>
    %c16_i32 = arith.constant 16 : i32
    %c0_i32 = arith.constant 0 : i32
    %17 = arith.cmpi eq, %c16_i32, %c0_i32 : i32
    %c1_i32 = arith.constant 1 : i32
    %18 = arith.select %17, %c1_i32, %c16_i32 : i32
    %19 = vector.broadcast %18 : i32 to vector<1x256xi32>
    %20 = arith.remsi %16, %19 : vector<1x256xi32>
    %c0_i32_12 = arith.constant 0 : i32
    %21 = vector.broadcast %c0_i32_12 : i32 to vector<1x256xi32>
    %22 = arith.cmpi ne, %20, %21 : vector<1x256xi32>
    %c0_i32_13 = arith.constant 0 : i32
    %23 = vector.broadcast %c0_i32_13 : i32 to vector<1x256xi32>
    %24 = arith.cmpi slt, %20, %23 : vector<1x256xi32>
    %c0_i32_14 = arith.constant 0 : i32
    %25 = arith.cmpi slt, %18, %c0_i32_14 : i32
    %26 = vector.broadcast %25 : i1 to vector<1x256xi1>
    %27 = vector.broadcast %26 : vector<1x256xi1> to vector<1x256xi1>
    %28 = arith.xori %24, %27 : vector<1x256xi1>
    %29 = arith.andi %28, %22 : vector<1x256xi1>
    %30 = vector.broadcast %18 : i32 to vector<1x256xi32>
    %31 = arith.addi %20, %30 : vector<1x256xi32>
    %32 = arith.select %29, %31, %20 : vector<1x256xi1>, vector<1x256xi32>
    %c0_i32_15 = arith.constant 0 : i32
    %33 = vector.broadcast %c0_i32_15 : i32 to vector<1x256xi32>
    %34 = arith.cmpi ne, %32, %33 : vector<1x256xi32>
    %35 = arith.extui %34 : vector<1x256xi1> to vector<1x256xi32>
    %36 = arith.sitofp %35 : vector<1x256xi32> to vector<1x256xf32>
    %37 = arith.truncf %36 : vector<1x256xf32> to vector<1x256xbf16>
    %c15_i32 = arith.constant 15 : i32
    %38 = vector.broadcast %c15_i32 : i32 to vector<1x256xi32>
    %39 = arith.cmpi ne, %32, %38 : vector<1x256xi32>
    %40 = arith.extui %39 : vector<1x256xi1> to vector<1x256xi32>
    %41 = arith.sitofp %40 : vector<1x256xi32> to vector<1x256xf32>
    %42 = arith.truncf %41 : vector<1x256xf32> to vector<1x256xbf16>
    %c0_16 = arith.constant 0 : index
    %c0_17 = arith.constant 0 : index
    %43 = vector.load %arg6[%c0_16, %c0_17] : memref<12x108xbf16, #tpu.memory_space<vmem>>, vector<12x108xbf16>
    %cst_18 = arith.constant 0.000000e+00 : bf16
    %44 = vector.broadcast %cst_18 : bf16 to vector<12x17xbf16>
    %45 = tpu.concatenate %44, %15, %44 in 1 : vector<12x17xbf16>, vector<12x256xbf16>, vector<12x17xbf16> -> vector<12x290xbf16>
    %46 = vector.extract_strided_slice %45 {offsets = [0, 0], sizes = [12, 256], strides = [1, 1]} : vector<12x290xbf16> to vector<12x256xbf16>
    %47 = vector.broadcast %37 : vector<1x256xbf16> to vector<12x256xbf16>
    %48 = arith.mulf %46, %47 : vector<12x256xbf16>
    %49 = vector.extract_strided_slice %45 {offsets = [0, 1], sizes = [12, 256], strides = [1, 1]} : vector<12x290xbf16> to vector<12x256xbf16>
    %50 = vector.extract_strided_slice %45 {offsets = [0, 2], sizes = [12, 256], strides = [1, 1]} : vector<12x290xbf16> to vector<12x256xbf16>
    %51 = vector.broadcast %42 : vector<1x256xbf16> to vector<12x256xbf16>
    %52 = arith.mulf %50, %51 : vector<12x256xbf16>
    %53 = vector.extract_strided_slice %45 {offsets = [0, 16], sizes = [12, 256], strides = [1, 1]} : vector<12x290xbf16> to vector<12x256xbf16>
    %54 = vector.broadcast %37 : vector<1x256xbf16> to vector<12x256xbf16>
    %55 = arith.mulf %53, %54 : vector<12x256xbf16>
    %56 = vector.extract_strided_slice %45 {offsets = [0, 17], sizes = [12, 256], strides = [1, 1]} : vector<12x290xbf16> to vector<12x256xbf16>
    %57 = vector.extract_strided_slice %45 {offsets = [0, 18], sizes = [12, 256], strides = [1, 1]} : vector<12x290xbf16> to vector<12x256xbf16>
    %58 = vector.broadcast %42 : vector<1x256xbf16> to vector<12x256xbf16>
    %59 = arith.mulf %57, %58 : vector<12x256xbf16>
    %60 = vector.extract_strided_slice %45 {offsets = [0, 32], sizes = [12, 256], strides = [1, 1]} : vector<12x290xbf16> to vector<12x256xbf16>
    %61 = vector.broadcast %37 : vector<1x256xbf16> to vector<12x256xbf16>
    %62 = arith.mulf %60, %61 : vector<12x256xbf16>
    %63 = vector.extract_strided_slice %45 {offsets = [0, 33], sizes = [12, 256], strides = [1, 1]} : vector<12x290xbf16> to vector<12x256xbf16>
    %64 = vector.extract_strided_slice %45 {offsets = [0, 34], sizes = [12, 256], strides = [1, 1]} : vector<12x290xbf16> to vector<12x256xbf16>
    %65 = vector.broadcast %42 : vector<1x256xbf16> to vector<12x256xbf16>
    %66 = arith.mulf %64, %65 : vector<12x256xbf16>
    %67 = tpu.concatenate %48, %49, %52, %55, %56, %59, %62, %63, %66 in 0 : vector<12x256xbf16>, vector<12x256xbf16>, vector<12x256xbf16>, vector<12x256xbf16>, vector<12x256xbf16>, vector<12x256xbf16>, vector<12x256xbf16>, vector<12x256xbf16>, vector<12x256xbf16> -> vector<108x256xbf16>
    %cst_19 = arith.constant dense<0.000000e+00> : vector<12x256xf32>
    %68 = tpu.matmul %43, %67, %cst_19 {dimension_numbers = #tpu.dot_dimension_numbers<[1], [0], [0], [1], [0, 0, 1, 1], [], []>} : vector<12x108xbf16>, vector<108x256xbf16>, vector<12x256xf32> -> vector<12x256xf32>
    %c0_20 = arith.constant 0 : index
    %c0_21 = arith.constant 0 : index
    %69 = vector.load %arg7[%c0_20, %c0_21] : memref<12x1xf32, #tpu.memory_space<vmem>>, vector<12x1xf32>
    %70 = vector.broadcast %69 : vector<12x1xf32> to vector<12x256xf32>
    %71 = arith.addf %68, %70 : vector<12x256xf32>
    %c0_22 = arith.constant 0 : index
    %c0_23 = arith.constant 0 : index
    %72 = vector.load %arg8[%c0_22, %c0_23] : memref<12x216xbf16, #tpu.memory_space<vmem>>, vector<12x216xbf16>
    %cst_24 = arith.constant 0.000000e+00 : bf16
    %73 = vector.broadcast %cst_24 : bf16 to vector<24x17xbf16>
    %74 = tpu.concatenate %73, %1, %73 in 1 : vector<24x17xbf16>, vector<24x256xbf16>, vector<24x17xbf16> -> vector<24x290xbf16>
    %75 = vector.extract_strided_slice %74 {offsets = [0, 0], sizes = [24, 256], strides = [1, 1]} : vector<24x290xbf16> to vector<24x256xbf16>
    %76 = vector.broadcast %37 : vector<1x256xbf16> to vector<24x256xbf16>
    %77 = arith.mulf %75, %76 : vector<24x256xbf16>
    %78 = vector.extract_strided_slice %74 {offsets = [0, 1], sizes = [24, 256], strides = [1, 1]} : vector<24x290xbf16> to vector<24x256xbf16>
    %79 = vector.extract_strided_slice %74 {offsets = [0, 2], sizes = [24, 256], strides = [1, 1]} : vector<24x290xbf16> to vector<24x256xbf16>
    %80 = vector.broadcast %42 : vector<1x256xbf16> to vector<24x256xbf16>
    %81 = arith.mulf %79, %80 : vector<24x256xbf16>
    %82 = vector.extract_strided_slice %74 {offsets = [0, 16], sizes = [24, 256], strides = [1, 1]} : vector<24x290xbf16> to vector<24x256xbf16>
    %83 = vector.broadcast %37 : vector<1x256xbf16> to vector<24x256xbf16>
    %84 = arith.mulf %82, %83 : vector<24x256xbf16>
    %85 = vector.extract_strided_slice %74 {offsets = [0, 17], sizes = [24, 256], strides = [1, 1]} : vector<24x290xbf16> to vector<24x256xbf16>
    %86 = vector.extract_strided_slice %74 {offsets = [0, 18], sizes = [24, 256], strides = [1, 1]} : vector<24x290xbf16> to vector<24x256xbf16>
    %87 = vector.broadcast %42 : vector<1x256xbf16> to vector<24x256xbf16>
    %88 = arith.mulf %86, %87 : vector<24x256xbf16>
    %89 = vector.extract_strided_slice %74 {offsets = [0, 32], sizes = [24, 256], strides = [1, 1]} : vector<24x290xbf16> to vector<24x256xbf16>
    %90 = vector.broadcast %37 : vector<1x256xbf16> to vector<24x256xbf16>
    %91 = arith.mulf %89, %90 : vector<24x256xbf16>
    %92 = vector.extract_strided_slice %74 {offsets = [0, 33], sizes = [24, 256], strides = [1, 1]} : vector<24x290xbf16> to vector<24x256xbf16>
    %93 = vector.extract_strided_slice %74 {offsets = [0, 34], sizes = [24, 256], strides = [1, 1]} : vector<24x290xbf16> to vector<24x256xbf16>
    %94 = vector.broadcast %42 : vector<1x256xbf16> to vector<24x256xbf16>
    %95 = arith.mulf %93, %94 : vector<24x256xbf16>
    %96 = tpu.concatenate %77, %78, %81, %84, %85, %88, %91, %92, %95 in 0 : vector<24x256xbf16>, vector<24x256xbf16>, vector<24x256xbf16>, vector<24x256xbf16>, vector<24x256xbf16>, vector<24x256xbf16>, vector<24x256xbf16>, vector<24x256xbf16>, vector<24x256xbf16> -> vector<216x256xbf16>
    %cst_25 = arith.constant dense<0.000000e+00> : vector<12x256xf32>
    %97 = tpu.matmul %72, %96, %cst_25 {dimension_numbers = #tpu.dot_dimension_numbers<[1], [0], [0], [1], [0, 0, 1, 1], [], []>} : vector<12x216xbf16>, vector<216x256xbf16>, vector<12x256xf32> -> vector<12x256xf32>
    %c0_26 = arith.constant 0 : index
    %c0_27 = arith.constant 0 : index
    %98 = vector.load %arg9[%c0_26, %c0_27] : memref<12x1xf32, #tpu.memory_space<vmem>>, vector<12x1xf32>
    %99 = vector.broadcast %98 : vector<12x1xf32> to vector<12x256xf32>
    %100 = arith.addf %97, %99 : vector<12x256xf32>
    %c0_28 = arith.constant 0 : index
    %c0_29 = arith.constant 0 : index
    %101 = vector.load %arg10[%c0_28, %c0_29] : memref<12x8xf32, #tpu.memory_space<vmem>>, vector<12x8xf32>
    %102 = vector.extract_strided_slice %101 {offsets = [0, 0], sizes = [12, 1], strides = [1, 1]} : vector<12x8xf32> to vector<12x1xf32>
    %103 = vector.extract_strided_slice %101 {offsets = [0, 1], sizes = [12, 1], strides = [1, 1]} : vector<12x8xf32> to vector<12x1xf32>
    %104 = vector.extract_strided_slice %101 {offsets = [0, 2], sizes = [12, 1], strides = [1, 1]} : vector<12x8xf32> to vector<12x1xf32>
    %105 = vector.extract_strided_slice %101 {offsets = [0, 3], sizes = [12, 1], strides = [1, 1]} : vector<12x8xf32> to vector<12x1xf32>
    %106 = vector.extract_strided_slice %101 {offsets = [0, 4], sizes = [12, 1], strides = [1, 1]} : vector<12x8xf32> to vector<12x1xf32>
    %107 = vector.extract_strided_slice %101 {offsets = [0, 5], sizes = [12, 1], strides = [1, 1]} : vector<12x8xf32> to vector<12x1xf32>
    %108 = vector.extract_strided_slice %101 {offsets = [0, 6], sizes = [12, 1], strides = [1, 1]} : vector<12x8xf32> to vector<12x1xf32>
    %109 = vector.extract_strided_slice %101 {offsets = [0, 7], sizes = [12, 1], strides = [1, 1]} : vector<12x8xf32> to vector<12x1xf32>
    %cst_30 = arith.constant dense<0.000000e+00> : vector<12xf32>
    %110 = vector.multi_reduction <add>, %71, %cst_30 [1] : vector<12x256xf32> to vector<12xf32>
    %111 = vector.shape_cast %110 : vector<12xf32> to vector<12x1xf32>
    %cst_31 = arith.constant 2.560000e+02 : f32
    %112 = vector.broadcast %cst_31 : f32 to vector<12x1xf32>
    %113 = arith.divf %111, %112 : vector<12x1xf32>
    %114 = vector.broadcast %113 : vector<12x1xf32> to vector<12x256xf32>
    %115 = arith.subf %71, %114 : vector<12x256xf32>
    %116 = arith.mulf %115, %115 : vector<12x256xf32>
    %cst_32 = arith.constant dense<0.000000e+00> : vector<12xf32>
    %117 = vector.multi_reduction <add>, %116, %cst_32 [1] : vector<12x256xf32> to vector<12xf32>
    %118 = vector.shape_cast %117 : vector<12xf32> to vector<12x1xf32>
    %cst_33 = arith.constant 2.560000e+02 : f32
    %119 = vector.broadcast %cst_33 : f32 to vector<12x1xf32>
    %120 = arith.divf %118, %119 : vector<12x1xf32>
    %cst_34 = arith.constant 9.99999974E-6 : f32
    %121 = vector.broadcast %cst_34 : f32 to vector<12x1xf32>
    %122 = arith.addf %120, %121 : vector<12x1xf32>
    %123 = math.rsqrt %122 : vector<12x1xf32>
    %124 = vector.broadcast %123 : vector<12x1xf32> to vector<12x256xf32>
    %125 = arith.mulf %115, %124 : vector<12x256xf32>
    %126 = vector.broadcast %106 : vector<12x1xf32> to vector<12x256xf32>
    %127 = arith.mulf %125, %126 : vector<12x256xf32>
    %128 = vector.broadcast %107 : vector<12x1xf32> to vector<12x256xf32>
    %129 = arith.addf %127, %128 : vector<12x256xf32>
    %130 = arith.mulf %102, %113 : vector<12x1xf32>
    %131 = arith.addf %130, %103 : vector<12x1xf32>
    %cst_35 = arith.constant 0.000000e+00 : f32
    %132 = vector.broadcast %cst_35 : f32 to vector<12x1xf32>
    %133 = arith.subf %132, %131 : vector<12x1xf32>
    %134 = math.exp %133 : vector<12x1xf32>
    %cst_36 = arith.constant 1.000000e+00 : f32
    %135 = vector.broadcast %cst_36 : f32 to vector<12x1xf32>
    %136 = arith.addf %135, %134 : vector<12x1xf32>
    %137 = tpu.reciprocal %136 {approx = true} : vector<12x1xf32> -> vector<12x1xf32>
    %138 = vector.broadcast %104 : vector<12x1xf32> to vector<12x256xf32>
    %139 = arith.mulf %138, %129 : vector<12x256xf32>
    %140 = vector.broadcast %105 : vector<12x1xf32> to vector<12x256xf32>
    %141 = arith.addf %139, %140 : vector<12x256xf32>
    %cst_37 = arith.constant 0.000000e+00 : f32
    %142 = vector.broadcast %cst_37 : f32 to vector<12x256xf32>
    %143 = arith.subf %142, %141 : vector<12x256xf32>
    %144 = math.exp %143 : vector<12x256xf32>
    %cst_38 = arith.constant 1.000000e+00 : f32
    %145 = vector.broadcast %cst_38 : f32 to vector<12x256xf32>
    %146 = arith.addf %145, %144 : vector<12x256xf32>
    %147 = tpu.reciprocal %146 {approx = true} : vector<12x256xf32> -> vector<12x256xf32>
    %148 = arith.mulf %108, %137 : vector<12x1xf32>
    %cst_39 = arith.constant 1.000000e+00 : f32
    %149 = vector.broadcast %cst_39 : f32 to vector<12x1xf32>
    %150 = arith.subf %149, %108 : vector<12x1xf32>
    %151 = vector.broadcast %150 : vector<12x1xf32> to vector<12x256xf32>
    %152 = arith.mulf %151, %147 : vector<12x256xf32>
    %153 = vector.broadcast %148 : vector<12x1xf32> to vector<12x256xf32>
    %154 = arith.addf %153, %152 : vector<12x256xf32>
    %155 = arith.mulf %71, %154 : vector<12x256xf32>
    %156 = vector.broadcast %109 : vector<12x1xf32> to vector<12x256xf32>
    %157 = arith.mulf %156, %155 : vector<12x256xf32>
    %158 = arith.addf %157, %100 : vector<12x256xf32>
    %c0_40 = arith.constant 0 : index
    %c0_41 = arith.constant 0 : index
    %c0_42 = arith.constant 0 : index
    %159 = vector.load %arg11[%c0_40, %c0_41, %c0_42] : memref<1x12x256xf32, #tpu.memory_space<vmem>>, vector<1x12x256xf32>
    %160 = vector.shape_cast %159 : vector<1x12x256xf32> to vector<12x256xf32>
    %161 = vector.shape_cast %158 : vector<12x256xf32> to vector<1x12x256xf32>
    tpu.vector_store %arg11[%c0_40, %c0_41, %c0_42], %161 {strides = array<i32>} : memref<1x12x256xf32, #tpu.memory_space<vmem>>, vector<1x12x256xf32>,
    return
  }
  func.func @transform_0(%arg0: i32) -> (i32, i32, i32) {
    %c0_i32 = arith.constant 0 : i32
    %c0_i32_0 = arith.constant 0 : i32
    %c0_i32_1 = arith.constant 0 : i32
    return %arg0, %c0_i32, %c0_i32_0 : i32, i32, i32
  }
  func.func @transform_1(%arg0: i32) -> (i32, i32) {
    %c0_i32 = arith.constant 0 : i32
    %c0_i32_0 = arith.constant 0 : i32
    %c0_i32_1 = arith.constant 0 : i32
    return %c0_i32, %c0_i32_0 : i32, i32
  }
  func.func @transform_2(%arg0: i32) -> (i32, i32) {
    %c0_i32 = arith.constant 0 : i32
    %c0_i32_0 = arith.constant 0 : i32
    %c0_i32_1 = arith.constant 0 : i32
    return %c0_i32, %c0_i32_0 : i32, i32
  }
  func.func @transform_3(%arg0: i32) -> (i32, i32) {
    %c0_i32 = arith.constant 0 : i32
    %c0_i32_0 = arith.constant 0 : i32
    %c0_i32_1 = arith.constant 0 : i32
    return %c0_i32, %c0_i32_0 : i32, i32
  }
  func.func @transform_4(%arg0: i32) -> (i32, i32) {
    %c0_i32 = arith.constant 0 : i32
    %c0_i32_0 = arith.constant 0 : i32
    %c0_i32_1 = arith.constant 0 : i32
    return %c0_i32, %c0_i32_0 : i32, i32
  }
  func.func @transform_5(%arg0: i32) -> (i32, i32) {
    %c0_i32 = arith.constant 0 : i32
    %c0_i32_0 = arith.constant 0 : i32
    %c0_i32_1 = arith.constant 0 : i32
    return %c0_i32, %c0_i32_0 : i32, i32
  }
  func.func @transform_6(%arg0: i32) -> (i32, i32) {
    %c0_i32 = arith.constant 0 : i32
    %c0_i32_0 = arith.constant 0 : i32
    %c0_i32_1 = arith.constant 0 : i32
    return %c0_i32, %c0_i32_0 : i32, i32
  }
  func.func @transform_7(%arg0: i32) -> (i32, i32) {
    %c0_i32 = arith.constant 0 : i32
    %c0_i32_0 = arith.constant 0 : i32
    %c0_i32_1 = arith.constant 0 : i32
    return %c0_i32, %c0_i32_0 : i32, i32
  }
  func.func @transform_8(%arg0: i32) -> (i32, i32) {
    %c0_i32 = arith.constant 0 : i32
    %c0_i32_0 = arith.constant 0 : i32
    %c0_i32_1 = arith.constant 0 : i32
    return %c0_i32, %c0_i32_0 : i32, i32
  }
  func.func @transform_9(%arg0: i32) -> (i32, i32) {
    %c0_i32 = arith.constant 0 : i32
    %c0_i32_0 = arith.constant 0 : i32
    %c0_i32_1 = arith.constant 0 : i32
    return %c0_i32, %c0_i32_0 : i32, i32
  }
  func.func @transform_10(%arg0: i32) -> (i32, i32, i32) {
    %c0_i32 = arith.constant 0 : i32
    %c0_i32_0 = arith.constant 0 : i32
    %c0_i32_1 = arith.constant 0 : i32
    return %arg0, %c0_i32, %c0_i32_0 : i32, i32, i32
  }
}

</mosaic_0001>

<bundles_post_ra>
// kernel: tpu_custom_call.1
= control target key start
LH: loop header
LB: loop body
LE: loop exit
PB: predicated region body
PF: predicated region fallthrough
CT: control target
= control target key end

     0   :  { %s1816_s13 = smov 0   ;;  %s2376_s0 = inlined_call_operand.vmem [shape: bf16[2,24,256], index: 0, kind: input, shape index: {}]   ;;  %s2377_s1 = inlined_call_operand.vmem [shape: bf16[54,24], index: 1, kind: input, shape index: {}]   ;;  %s2378_s2 = inlined_call_operand.vmem [shape: f32[54,1], index: 2, kind: input, shape index: {}]   ;;  %s2379_s3 = inlined_call_operand.vmem [shape: bf16[12,54], index: 3, kind: input, shape index: {}]   ;;  %s2380_s4 = inlined_call_operand.vmem [shape: f32[12,1], index: 4, kind: input, shape index: {}]   ;;  %s2381_s5 = inlined_call_operand.vmem [shape: bf16[12,108], index: 5, kind: input, shape index: {}]   ;;  %s2382_s6 = inlined_call_operand.vmem [shape: f32[12,1], index: 6, kind: input, shape index: {}]   ;;  %s2383_s7 = inlined_call_operand.vmem [shape: bf16[12,216], index: 7, kind: input, shape index: {}]   ;;  %s2384_s8 = inlined_call_operand.vmem [shape: f32[12,1], index: 8, kind: input, shape index: {}]   ;;  %s2385_s9 = inlined_call_operand.vmem [shape: f32[12,8], index: 9, kind: input, shape index: {}]   ;;  %s2386_s10 = inlined_call_operand.vmem [shape: f32[2,12,256], index: 10, kind: output, shape index: {}]  }
   0x1 LB: > { %s1601_s14 = sadd.s32 4294967295, %s1736_s13   ;;  %p1605_p0 = scmp.ge.s32.totalorder %s1736_s13, 1  ;;  %s1736_s13 = sphi %s1816_s13, %s20_s13  }
   0x2   : > { %p312_p1 = scmp.lt.s32.totalorder %s1736_s13, 3 }
   0x4   : > { %p313_p2 = pnand %p1605_p0, %p312_p1 }
   0x5   : > { %p350_p3 = scmp.lt.s32.totalorder (!%p313_p2), %s1601_s14, 1  ;;  %s1740_s29 = smov (!%p313_p2), 34  }
   0x6   : > { %316 = sbr.rel (%p313_p2) target bundleno = 1389 (0x56d), region = 60  ;;  %s1741_s30 = smov (!%p313_p2), 17  }
   0x7   : > { %s1742_s11 = smov (!%p313_p2), 32   ;;  %s1743_s12 = smov (!%p313_p2), 18  }
   0x8   : > { %s1744_s15 = smov (!%p313_p2), 2   ;;  %s1745_s16 = smov (!%p313_p2), 16  }
   0x9   : > { %s1747_s18 = smov (!%p313_p2), 94   ;;  %s1748_s19 = smov (!%p313_p2), 95  }
   0xa   : > { %s1749_s20 = smov (!%p313_p2), 96   ;;  %s1750_s21 = smov (!%p313_p2), 110  }
   0xb   : > { %v1738_v0 = vmov 0   ;;  %s2388_s14 = smov (!%p350_p3, %s1601_s14), 1  ;;  %v377_v1 = vld [vmem:[%s2378_s2 + $0x30] sm:$0x3f]  ;;  %v376_v2 = vld [vmem:[%s2378_s2 + $0x28] sm:$0xff]  ;;  %v375_v3 = vld [vmem:[%s2378_s2 + $0x20] sm:$0xff] }
   0xc   : > { %498 = vmatprep.mubr.bf16.mxu1 %v1738_v0  ;;  %1672 = vset.pattern.permute.xlu1 %v1738_v0  ;;  %s1639_s17 = smul.u32 24, %s2388_s14  ;;  %v373_v4 = vld [vmem:[%s2378_s2 + $0x10] sm:$0xff]  ;;  %vm459_vm0 = vcmask 1043456   ;;  %v374_v9 = vld [vmem:[%s2378_s2 + $0x18] sm:$0xff]  ;;  %v371_v11 = vld [vmem:[%s2378_s2] sm:$0xff]  ;;  %vm446_vm1 = vcmask 195584  }
   0xd   : > { %1671 = vset.pattern.permute.xlu0 %v1738_v0  ;;  %621 = vmatprep.mubr.bf16.mxu0 %v1738_v0  ;;  %v372_v13 = vld [vmem:[%s2378_s2 + $0x8] sm:$0xff]  ;;  %v1693_v14 = vld [vmem:[%s2377_s1] sm:$0xff]   ;;  %v1695_v18 = vld [vmem:[%s2377_s1 + $0x10] sm:$0xff]   ;;  %vm582_vm2 = vcmask 1042432   ;;  %vm578_vm3 = vcmask 441344   ;;  %vm685_vm8 = vcmask 138240  }
   0xe   : > { %410 = vperm.xlu0 %1671, %v377_v1   ;;  %405 = vperm.xlu1 %1672, %v376_v2   ;;  %s354_s24 = scalar_lea.vmem %s2376_s0, %s1639_s17  ;;  %v561_v15 = vld [vmem:[%s2380_s4] sm:$0xff]  ;;  %v562_v16 = vld [vmem:[%s2380_s4 + $0x8] sm:$0xf]  ;;  %v1696_v19 = vld [vmem:[%s2377_s1 + $0x18] ss:$0 sps:$4 sm:$0x77]  }
   0xf   : > { %v363_v5 = vld [vmem:[%s354_s24 + $0x10] sm:$0xff]  ;;  %v1850_v8 = vld [vmem:[%s354_s24 + $0x4] ss:$8 sps:$4 sm:$0xff]   ;;  %v1862_v12 = vld [vmem:[%s354_s24] ss:$8 sps:$4 sm:$0xff]   ;;  %s1746_s17 = smov 111  }
  0x10   : > { %v1846_v6 = vcombine.high %v363_v5, %v363_v5  ;;  %v1848_v7 = vcombine.low %v363_v5, %v363_v5  ;;  %v1694_v17 = vld [vmem:[%s2377_s1 + $0x8] sm:$0xff]   ;;  %vm754_vm9 = vcmask 277504   ;;  %vm742_vm10 = vcmask 261120   ;;  %s1751_s22 = smov 126   ;;  %s1752_s23 = smov 112  }
  0x11   : > { %vm730_vm11 = vcmask 146432   ;;  %vm704_vm12 = vcmask 15360   ;;  %vm718_vm13 = vcmask 130048   ;;  %s1753_s24 = smov 127   ;;  %vm866_vm14 = vcmask 769024   ;;  %s1638_s26 = sshll.u32 %s2388_s14, 5 }
  0x12   : > { %400 = vperm.xlu0 %1671, %v375_v3   ;;  %390 = vperm.xlu1 %1672, %v373_v4   ;;  %v461_v10 = vsel %vm459_vm0, %v1848_v7, 0  ;;  %vm869_vm15 = vcmask 1045504  }
  0x13   : > { %1617 = vmatprep.subr.msk.bf16.mxu1 %vm459_vm0, %v1846_v6 }
  0x14   : > { %479 = vmatpush1.bf16.msra.mxu1 %v461_v10 }
  0x15   : > { %480 = vmatprep.subr.bf16.mxu1 %v1850_v8 }
  0x16   : > { %395 = vperm.xlu0 %1671, %v374_v9   ;;  %380 = vperm.xlu1 %1672, %v371_v11  }
  0x18   : > { %481 = vmatpush1.bf16.msra.mxu1 %v1862_v12 }
  0x1a   : > { %385 = vperm.xlu0 %1671, %v372_v13   ;;  %565 = vperm.xlu1 %1672, %v561_v15  }
  0x1b   : > { %1618 = vmatmul.mubr.msk.bf16.vlgmr.msra.gmra.mxu1 %vm446_vm1, %v1693_v14 }
  0x1c   : > { %508 = vmatprep.mubr.bf16.mxu1 %v1738_v0 }
  0x1e   : > { %570 = vperm.xlu0 %1671, %v562_v16  }
  0x23   : > { %1619 = vmatmul.mubr.msk.bf16.gmra.mxu1 %vm446_vm1, %v1694_v17 }
  0x24   : > { %518 = vmatprep.mubr.bf16.mxu1 %v1738_v0 }
  0x2b   : > { %1620 = vmatmul.mubr.msk.bf16.gmra.mxu1 %vm446_vm1, %v1695_v18 }
  0x2c   : > { %528 = vmatprep.mubr.bf16.mxu1 %v1738_v0 }
  0x33   : > { %1621 = vmatmul.mubr.msk.bf16.gmra.mxu1 %vm446_vm1, %v1696_v19  ;;  %vm842_vm1 = vcmask 785408  }
  0x89   : > { %v411_v27 = vpop.permute.xlu0 %410  ;;  %v406_v33 = vpop.permute.xlu1 %405 }
  0x8d   : > { %v401_v31 = vpop.permute.xlu0 %400  ;;  %v391_v43 = vpop.permute.xlu1 %390 }
  0x91   : > { %v396_v38 = vpop.permute.xlu0 %395  ;;  %v381_v62 = vpop.permute.xlu1 %380 }
  0x95   : > { %v386_v55 = vpop.permute.xlu0 %385 }
  0xdb   : > { %v500_v20 = vpop.f32.mrf.mxu1 }
  0xdc   : > { %v501_v13 = vadd.f32 %v500_v20, %v381_v62  ;;  %v634_v20 = vlaneseq }
  0xdd   : > { %v502_v21 = vpop.f32.mrf.mxu1 }
  0xde   : > { %v503_v2 = vadd.f32 %v502_v21, %v381_v62  ;;  %v537_v19 = vmax.f32 %v501_v13, 0.0  ;;  %v1697_v21 = vld [vmem:[%s2379_s3] sm:$0x3f]  }
  0xdf   : > { %v504_v22 = vpop.f32.mrf.mxu1 }
  0xe0   : > { %v505_v4 = vadd.f32 %v504_v22, %v386_v55  ;;  %v538_v15 = vmax.f32 %v503_v2, 0.0  ;;  %v635_v22 = vand.u32 127, %v634_v20 }
  0xe1   : > { %v506_v23 = vpop.f32.mrf.mxu1 }
  0xe2   : > { %v507_v58 = vadd.f32 %v506_v23, %v386_v55  ;;  %v539_v16 = vmax.f32 %v505_v4, 0.0 }
  0xe3   : > { %v510_v24 = vpop.f32.mrf.mxu1 }
  0xe4   : > { %v511_v63 = vadd.f32 %v510_v24, %v391_v43  ;;  %v540_v10 = vmax.f32 %v507_v58, 0.0  ;;  %v551_v23 = vpack.c.bf16 %v539_v16, %v537_v19  ;;  %v636_v24 = vadd.s32 128, %v635_v22 }
  0xe5   : > { %v512_v25 = vpop.f32.mrf.mxu1 }
  0xe6   : > { %v513_v52 = vadd.f32 %v512_v25, %v391_v43  ;;  %v541_v14 = vmax.f32 %v511_v63, 0.0  ;;  %v552_v18 = vpack.c.bf16 %v540_v10, %v538_v15  ;;  %v641_v25 = vand.u32 15, %v635_v22 }
  0xe7   : > { %v514_v26 = vpop.f32.mrf.mxu1 }
  0xe8   : > { %v515_v56 = vadd.f32 %v514_v26, %v396_v38  ;;  %v542_v3 = vmax.f32 %v513_v52, 0.0  ;;  %v648_v26 = vand.u32 15, %v636_v24  ;;  %vm669_vm4 = vcmp.ne.s32.totalorder %v641_v25, 15 }
  0xe9   : > { %v516_v28 = vpop.f32.mrf.mxu1  ;;  %vm661_vm6 = vcmp.ne.s32.totalorder %v641_v25, 0 }
  0xea   : > { %v517_v46 = vadd.f32 %v516_v28, %v396_v38  ;;  %v543_v5 = vmax.f32 %v515_v56, 0.0  ;;  %vm670_vm5 = vcmp.ne.s32.totalorder %v648_v26, 15  ;;  %vm662_vm7 = vcmp.ne.s32.totalorder %v648_v26, 0 }
  0xeb   : > { %v520_v29 = vpop.f32.mrf.mxu1 }
  0xec   : > { %v521_v50 = vadd.f32 %v520_v29, %v401_v31  ;;  %v544_v59 = vmax.f32 %v517_v46, 0.0  ;;  %v553_v17 = vpack.c.bf16 %v543_v5, %v541_v14 }
  0xed   : > { %v522_v30 = vpop.f32.mrf.mxu1 }
  0xee   : > { %v523_v40 = vadd.f32 %v522_v30, %v401_v31  ;;  %v545_v1 = vmax.f32 %v521_v50, 0.0  ;;  %v554_v11 = vpack.c.bf16 %v544_v59, %v542_v3 }
  0xef   : > { %v524_v32 = vpop.f32.mrf.mxu1 }
  0xf0   : > { %v525_v44 = vadd.f32 %v524_v32, %v406_v33  ;;  %v546_v53 = vmax.f32 %v523_v40, 0.0 }
  0xf1   : > { %v526_v34 = vpop.f32.mrf.mxu1 }
  0xf2   : > { %v527_v36 = vadd.f32 %v526_v34, %v406_v33  ;;  %v547_v57 = vmax.f32 %v525_v44, 0.0 }
  0xf3   : > { %v530_v35 = vpop.f32.mrf.mxu1 }
  0xf4   : > { %v531_v37 = vadd.f32 %v530_v35, %v411_v27  ;;  %v548_v47 = vmax.f32 %v527_v36, 0.0  ;;  %v555_v9 = vpack.c.bf16 %v547_v57, %v545_v1  ;;  %v566_v36 = vpop.permute.xlu1 %565 }
  0xf5   : > { %v532_v39 = vpop.f32.mrf.mxu1 }
  0xf6   : > { %v549_v41 = vmax.f32 %v531_v37, 0.0  ;;  %v533_v42 = vadd.f32 %v532_v39, %v411_v27  ;;  %v556_v60 = vpack.c.bf16 %v548_v47, %v546_v53  ;;  %v1739_v27 = vmov 0.0   ;;  %v571_v37 = vpop.permute.xlu0 %570 }
  0xf7   : > { %v534_v45 = vpop.f32.mrf.mxu1  ;;  %v1627_v28 = vsel %vm669_vm4, 1.0, %v1739_v27  ;;  %v1628_v30 = vsel %vm670_vm5, 1.0, %v1739_v27  ;;  %v1625_v32 = vsel %vm661_vm6, 1.0, %v1739_v27  ;;  %v1626_v33 = vsel %vm662_vm7, 1.0, %v1739_v27 }
  0xf8   : > { %v557_v48 = vpack.c.bf16 %v549_v41, %v549_v41  ;;  %v550_v49 = vmax.f32 %v533_v42, 0.0  ;;  %v675_v29 = vpack.c.bf16 %v1627_v28, %v1627_v28  ;;  %v676_v31 = vpack.c.bf16 %v1628_v30, %v1628_v30 }
  0xf9   : > { %v535_v51 = vpop.f32.mrf.mxu1  ;;  %v1894_v45 = vpack.c.bf16 %v1625_v32, %v1625_v32  ;;  %v1897_v47 = vpack.c.bf16 %v1626_v33, %v1626_v33  ;;  %vm827_vm4 = vcmask 900096   ;;  %vm812_vm5 = vcmask 908288  }
  0xfa   : > { %v558_v54 = vpack.c.bf16 %v550_v49, %v550_v49  ;;  %v584_v61 = vsel %vm582_vm2, %v557_v48, 0  ;;  %750 = vrot.lane.b32.xlu1 %v675_v29, %s1740_s29  ;;  %752 = vrot.lane.b32.xlu0 %v676_v31, %s1740_s29  ;;  %vm803_vm6 = vcmask 916480   ;;  %vm788_vm7 = vcmask 1031168   ;;  %s359_s29 = scalar_lea.vmem %s2386_s10, %s1638_s26 }
  0xfc   : > { %1623 = vmatprep.subr.msk.bf16.mxu0 %vm582_vm2, %v558_v54  ;;  %vm854_vm2 = vcmask 777216  }
  0xfd   : > { %598 = vmatpush1.bf16.msra.mxu0 %v584_v61 }
  0xfe   : > { %599 = vmatprep.subr.bf16.mxu0 %v556_v60 }
 0x101   : > { %600 = vmatpush1.bf16.msra.mxu0 %v555_v9 }
 0x102   : > { %601 = vmatprep.subr.bf16.mxu0 %v554_v11 }
 0x105   : > { %602 = vmatpush1.bf16.msra.mxu0 %v553_v17 }
 0x106   : > { %603 = vmatprep.subr.bf16.mxu0 %v552_v18 }
 0x109   : > { %604 = vmatpush1.bf16.msra.mxu0 %v551_v23 }
 0x10c   : > { %1624 = vmatmul.mubr.msk.bf16.vlgmr.msra.gmra.mxu0 %vm578_vm3, %v1697_v21  ;;  %vm884_vm3 = vcmask 1041408  }
 0x10d   : > { %970 = vmatprep.mubr.bf16.mxu0 %v1738_v0 }
 0x16c   : > { %v1904_v48 = vpop.permute.xlu1 %750  ;;  %v1906_v49 = vpop.permute.xlu0 %752 }
 0x16d   : > { %v1927_v57 = vsel %vm754_vm9, %v1904_v48, %v1906_v49  ;;  %vm773_vm9 = vcmask 1039360  }
 0x1cc   : > { %v623_v34 = vpop.f32.mrf.mxu0 }
 0x1cd   : > { %v624_v39 = vadd.f32 %v623_v34, %v566_v36 }
 0x1ce   : > { %v625_v35 = vpop.f32.mrf.mxu0 }
 0x1cf   : > { %v626_v42 = vadd.f32 %v625_v35, %v566_v36 }
 0x1d0   : > { %v627_v38 = vpop.f32.mrf.mxu0 }
 0x1d1   : > { %v628_v40 = vadd.f32 %v627_v38, %v571_v37 }
 0x1d2   : > { %v629_v41 = vpop.f32.mrf.mxu0 }
 0x1d3   : > { %v632_v43 = vpack.c.bf16 %v628_v40, %v624_v39  ;;  %v630_v44 = vadd.f32 %v629_v41, %v571_v37 }
 0x1d5   : > { %v633_v46 = vpack.c.bf16 %v630_v44, %v626_v42  ;;  %681 = vrot.lane.b32.xlu1 %v632_v43, %s1741_s30 }
 0x1d7   : > { %683 = vrot.lane.b32.xlu0 %v633_v46, %s1741_s30 }
 0x1d9   : > { %738 = vrot.lane.b32.xlu1 %v1894_v45, %s1742_s11 }
 0x1db   : > { %740 = vrot.lane.b32.xlu0 %v1897_v47, %s1742_s11 }
 0x1dd   : > { %726 = vrot.lane.b32.xlu1 %v675_v29, %s1743_s12 }
 0x1df   : > { %728 = vrot.lane.b32.xlu0 %v676_v31, %s1743_s12 }
 0x1e1   : > { %700 = vrot.lane.b32.xlu1 %v675_v29, %s1744_s15 }
 0x1e3   : > { %702 = vrot.lane.b32.xlu0 %v676_v31, %s1744_s15 }
 0x1e5   : > { %714 = vrot.lane.b32.xlu1 %v1894_v45, %s1745_s16 }
 0x1e7   : > { %716 = vrot.lane.b32.xlu0 %v1897_v47, %s1745_s16 }
 0x247   : > { %v682_v50 = vpop.permute.xlu1 %681 }
 0x248   : > { %v1909_v51 = vsel %vm685_vm8, 0, %v682_v50 }
 0x249   : > { %v684_v52 = vpop.permute.xlu0 %683  ;;  %806 = vrot.lane.b32.xlu1 %v1909_v51, %s1746_s17  ;;  %v759_v56 = vmul.bf16 %v1904_v48, %v1909_v51  ;;  %v845_v60 = vrot.slane %v1909_v51, 6  ;;  %v764_v41 = vrot.slane %v1909_v51, 2 }
 0x24a   : > { %v1914_v53 = vsel %vm685_vm8, %v682_v50, %v684_v52  ;;  %v1917_v54 = vsel %vm685_vm8, %v684_v52, 0 }
 0x24b   : > { %810 = vrot.lane.b32.xlu0 %v1917_v54, %s1746_s17  ;;  %v1921_v55 = vpop.permute.xlu1 %738  ;;  %v760_v58 = vmul.bf16 %v1927_v57, %v1914_v53  ;;  %v846_v62 = vrot.slane %v1914_v53, 6  ;;  %v761_v5 = vmul.bf16 %v1906_v49, %v1917_v54  ;;  %v847_v14 = vrot.slane %v1917_v54, 6 }
 0x24c   : > { %v747_v63 = vmul.bf16 %v1921_v55, %v1909_v51  ;;  %v765_v39 = vrot.slane %v1914_v53, 2  ;;  %v766_v40 = vrot.slane %v1917_v54, 2 }
 0x24d   : > { %860 = vrot.lane.b32.xlu1 %v759_v56, %s1747_s18  ;;  %v1936_v61 = vpop.permute.xlu0 %740 }
 0x24e   : > { %v833_v2 = vrot.slane %v747_v63, 4  ;;  %v1961_v13 = vsel %vm742_vm10, %v1921_v55, %v1936_v61  ;;  %v749_v21 = vmul.bf16 %v1936_v61, %v1917_v54  ;;  %vm928_vm10 = vcmask 883712  }
 0x24f   : > { %862 = vrot.lane.b32.xlu0 %v760_v58, %s1747_s18  ;;  %v1933_v59 = vpop.permute.xlu1 %726  ;;  %v748_v18 = vmul.bf16 %v1961_v13, %v1914_v53 }
 0x250   : > { %v735_v3 = vmul.bf16 %v1933_v59, %v1909_v51  ;;  %v835_v26 = vrot.slane %v749_v21, 4 }
 0x251   : > { %848 = vrot.lane.b32.xlu1 %v845_v60, %s1748_s19  ;;  %v1949_v4 = vpop.permute.xlu0 %728  ;;  %v834_v20 = vrot.slane %v748_v18, 4 }
 0x252   : > { %v818_v10 = vrot.slane %v735_v3, 2  ;;  %v1974_v19 = vsel %vm730_vm11, %v1933_v59, %v1949_v4  ;;  %v737_v27 = vmul.bf16 %v1949_v4, %v1917_v54 }
 0x253   : > { %850 = vrot.lane.b32.xlu0 %v846_v62, %s1748_s19  ;;  %v1943_v1 = vpop.permute.xlu1 %700  ;;  %v736_v22 = vmul.bf16 %v1974_v19, %v1914_v53 }
 0x254   : > { %v709_v11 = vmul.bf16 %v1943_v1, %v1909_v51  ;;  %v820_v31 = vrot.slane %v737_v27, 2 }
 0x255   : > { %808 = vrot.lane.b32.xlu1 %v1914_v53, %s1746_s17  ;;  %v1967_v16 = vpop.permute.xlu0 %702  ;;  %v819_v28 = vrot.slane %v736_v22, 2 }
 0x256   : > { %v779_v17 = vrot.slane %v709_v11, 4  ;;  %v1984_v24 = vsel %vm704_vm12, %v1943_v1, %v1967_v16  ;;  %v711_v32 = vmul.bf16 %v1967_v16, %v1917_v54 }
 0x257   : > { %836 = vrot.lane.b32.xlu0 %v833_v2, %s1749_s20  ;;  %v1954_v9 = vpop.permute.xlu1 %714  ;;  %v710_v29 = vmul.bf16 %v1984_v24, %v1914_v53 }
 0x258   : > { %v723_v15 = vmul.bf16 %v1954_v9, %v1909_v51  ;;  %v781_v35 = vrot.slane %v711_v32, 4 }
 0x259   : > { %864 = vrot.lane.b32.xlu1 %v761_v5, %s1747_s18  ;;  %v1986_v25 = vpop.permute.xlu0 %716  ;;  %v780_v33 = vrot.slane %v710_v29, 4 }
 0x25a   : > { %v794_v23 = vrot.slane %v723_v15, 6  ;;  %v1996_v30 = vsel %vm718_vm13, %v1954_v9, %v1986_v25  ;;  %v725_v36 = vmul.bf16 %v1986_v25, %v1917_v54 }
 0x25b   : > { %821 = vrot.lane.b32.xlu0 %v818_v10, %s1750_s21  ;;  %v724_v34 = vmul.bf16 %v1996_v30, %v1914_v53 }
 0x25c   : > { %v796_v38 = vrot.slane %v725_v36, 6 }
 0x25d   : > { %852 = vrot.lane.b32.xlu1 %v847_v14, %s1748_s19  ;;  %v795_v37 = vrot.slane %v724_v34, 6 }
 0x25f   : > { %782 = vrot.lane.b32.xlu0 %v779_v17, %s1751_s22 }
 0x261   : > { %797 = vrot.lane.b32.xlu1 %v794_v23, %s1752_s23 }
 0x263   : > { %838 = vrot.lane.b32.xlu0 %v834_v20, %s1749_s20 }
 0x265   : > { %840 = vrot.lane.b32.xlu1 %v835_v26, %s1749_s20 }
 0x267   : > { %823 = vrot.lane.b32.xlu0 %v819_v28, %s1750_s21 }
 0x269   : > { %825 = vrot.lane.b32.xlu1 %v820_v31, %s1750_s21 }
 0x26b   : > { %784 = vrot.lane.b32.xlu0 %v780_v33, %s1751_s22 }
 0x26d   : > { %786 = vrot.lane.b32.xlu1 %v781_v35, %s1751_s22 }
 0x26f   : > { %799 = vrot.lane.b32.xlu0 %v795_v37, %s1752_s23 }
 0x271   : > { %801 = vrot.lane.b32.xlu1 %v796_v38, %s1752_s23 }
 0x273   : > { %769 = vrot.lane.b32.xlu0 %v765_v39, %s1753_s24 }
 0x275   : > { %771 = vrot.lane.b32.xlu1 %v766_v40, %s1753_s24 }
 0x277   : > { %767 = vrot.lane.b32.xlu0 %v764_v41, %s1753_s24 }
 0x279   : > { %983 = vrot.lane.b32.xlu1 %v1862_v12, %s1741_s30 }
 0x27b   : > { %985 = vrot.lane.b32.xlu0 %v1850_v8, %s1741_s30 }
 0x27d   : > { %987 = vrot.lane.b32.xlu1 %v1848_v7, %s1741_s30 }
 0x27f   : > { %989 = vrot.lane.b32.xlu0 %v1846_v6, %s1741_s30 }
 0x2bb   : > { %v807_v42 = vpop.permute.xlu1 %806 }
 0x2bd   : > { %v811_v43 = vpop.permute.xlu0 %810 }
 0x2bf   : > { %v861_v44 = vpop.permute.xlu1 %860 }
 0x2c1   : > { %v863_v46 = vpop.permute.xlu0 %862 }
 0x2c2   : > { %v867_v12 = vsel %vm866_vm14, %v861_v44, %v863_v46 }
 0x2c3   : > { %v849_v50 = vpop.permute.xlu1 %848  ;;  %v933_v7 = vsel %vm869_vm15, %v867_v12, 0 }
 0x2c5   : > { %v851_v52 = vpop.permute.xlu0 %850 }
 0x2c6   : > { %v855_v14 = vsel %vm854_vm2, %v849_v50, %v851_v52 }
 0x2c7   : > { %v809_v54 = vpop.permute.xlu1 %808 }
 0x2c8   : > { %v814_v27 = vsel %vm812_vm5, %v809_v54, %v811_v43  ;;  %v813_v32 = vsel %vm812_vm5, %v807_v42, %v809_v54  ;;  %v697_v54 = vmul.bf16 %v1914_v53, %v1897_v47  ;;  %v1698_v53 = vld [vmem:[%s2381_s5] sm:$0x3f]  }
 0x2c9   : > { %v837_v56 = vpop.permute.xlu0 %836 }
 0x2cb   : > { %v865_v58 = vpop.permute.xlu1 %864 }
 0x2cc   : > { %v868_v8 = vsel %vm866_vm14, %v863_v46, %v865_v58 }
 0x2cd   : > { %v822_v60 = vpop.permute.xlu0 %821  ;;  %1630 = vmatprep.subr.msk.bf16.mxu0 %vm869_vm15, %v868_v8 }
 0x2ce   : > { %941 = vmatpush1.bf16.msra.mxu0 %v933_v7  ;;  %v696_v7 = vmul.bf16 %v1909_v51, %v1894_v45 }
 0x2cf   : > { %v853_v6 = vpop.permute.xlu1 %852 }
 0x2d0   : > { %v856_v10 = vsel %vm854_vm2, %v851_v52, %v853_v6 }
 0x2d1   : > { %v783_v62 = vpop.permute.xlu0 %782 }
 0x2d3   : > { %v798_v63 = vpop.permute.xlu1 %797 }
 0x2d5   : > { %v839_v2 = vpop.permute.xlu0 %838 }
 0x2d6   : > { %v843_v3 = vsel %vm842_vm1, %v837_v56, %v839_v2 }
 0x2d7   : > { %v841_v5 = vpop.permute.xlu1 %840  ;;  %v906_v18 = vsel %vm884_vm3, %v843_v3, %v855_v14 }
 0x2d8   : > { %v844_v11 = vsel %vm842_vm1, %v839_v2, %v841_v5 }
 0x2d9   : > { %v824_v15 = vpop.permute.xlu0 %823  ;;  %v909_v17 = vsel %vm884_vm3, %v844_v11, %v856_v10 }
 0x2da   : > { %942 = vmatprep.subr.bf16.mxu0 %v909_v17  ;;  %v828_v23 = vsel %vm827_vm4, %v822_v60, %v824_v15 }
 0x2db   : > { %943 = vmatpush1.bf16.msra.mxu0 %v906_v18  ;;  %v826_v21 = vpop.permute.xlu1 %825  ;;  %v900_v28 = vsel %vm459_vm0, %v828_v23, %v843_v3  ;;  %v893_v34 = vsel %vm869_vm15, %v813_v32, %v828_v23 }
 0x2dc   : > { %v829_v20 = vsel %vm827_vm4, %v824_v15, %v826_v21 }
 0x2dd   : > { %v785_v22 = vpop.permute.xlu0 %784  ;;  %v903_v26 = vsel %vm459_vm0, %v829_v20, %v844_v11  ;;  %v897_v31 = vsel %vm869_vm15, %v814_v27, %v829_v20 }
 0x2de   : > { %944 = vmatprep.subr.bf16.mxu0 %v903_v26  ;;  %v789_v39 = vsel %vm788_vm7, %v783_v62, %v785_v22 }
 0x2df   : > { %945 = vmatpush1.bf16.msra.mxu0 %v900_v28  ;;  %v787_v29 = vpop.permute.xlu1 %786 }
 0x2e0   : > { %946 = vmatprep.subr.bf16.mxu0 %v897_v31  ;;  %v790_v37 = vsel %vm788_vm7, %v785_v22, %v787_v29 }
 0x2e1   : > { %v800_v33 = vpop.permute.xlu0 %799 }
 0x2e2   : > { %v804_v35 = vsel %vm803_vm6, %v798_v63, %v800_v33 }
 0x2e3   : > { %947 = vmatpush1.bf16.msra.mxu0 %v893_v34  ;;  %v802_v36 = vpop.permute.xlu1 %801  ;;  %v886_v42 = vsel %vm884_vm3, %v789_v39, %v804_v35 }
 0x2e4   : > { %v805_v38 = vsel %vm803_vm6, %v800_v33, %v802_v36 }
 0x2e5   : > { %v770_v40 = vpop.permute.xlu0 %769  ;;  %v889_v41 = vsel %vm884_vm3, %v790_v37, %v805_v38  ;;  %v912_v38 = vld [vmem:[%s2382_s6 + $0x8] sm:$0xf] }
 0x2e6   : > { %948 = vmatprep.subr.bf16.mxu0 %v889_v41 }
 0x2e7   : > { %949 = vmatpush1.bf16.msra.mxu0 %v886_v42  ;;  %v772_v43 = vpop.permute.xlu1 %771  ;;  %v911_v42 = vld [vmem:[%s2382_s6] sm:$0xff] }
 0x2e8   : > { %v775_v44 = vsel %vm773_vm9, %v770_v40, %v772_v43 }
 0x2e9   : > { %v768_v46 = vpop.permute.xlu0 %767  ;;  %v882_v50 = vsel %vm459_vm0, %v775_v44, %v790_v37  ;;  %v876_v58 = vsel %vm869_vm15, %v697_v54, %v775_v44 }
 0x2ea   : > { %v774_v52 = vsel %vm773_vm9, %v768_v46, %v770_v40  ;;  %950 = vmatprep.subr.bf16.mxu0 %v882_v50 }
 0x2eb   : > { %v984_v56 = vpop.permute.xlu1 %983  ;;  %v879_v12 = vsel %vm459_vm0, %v774_v52, %v789_v39  ;;  %v872_v62 = vsel %vm869_vm15, %v696_v7, %v774_v52 }
 0x2ec   : > { %951 = vmatpush1.bf16.msra.mxu0 %v879_v12  ;;  %v2070_v51 = vsel %vm685_vm8, 0, %v984_v56 }
 0x2ed   : > { %v986_v8 = vpop.permute.xlu0 %985  ;;  %952 = vmatprep.subr.bf16.mxu0 %v876_v58  ;;  %v1023_v15 = vmul.bf16 %v2070_v51, %v1933_v59  ;;  %v1017_v40 = vmul.bf16 %v2070_v51, %v1954_v9 }
 0x2ee   : > { %v2058_v60 = vsel %vm685_vm8, %v986_v8, 0  ;;  %v2061_v6 = vsel %vm685_vm8, %v984_v56, %v986_v8  ;;  %v1046_v8 = vrot.slane %v2070_v51, 4 }
 0x2ef   : > { %v988_v63 = vpop.permute.xlu1 %987  ;;  %v1025_v3 = vmul.bf16 %v2058_v60, %v1949_v4  ;;  %v1024_v11 = vmul.bf16 %v2061_v6, %v1974_v19  ;;  %v1154_v23 = vrot.slane %v1023_v15, 4  ;;  %v1018_v27 = vmul.bf16 %v2061_v6, %v1996_v30 }
 0x2f0   : > { %953 = vmatpush1.bf16.msra.mxu0 %v872_v62  ;;  %v2087_v18 = vsel %vm685_vm8, 0, %v988_v63  ;;  %v1019_v34 = vmul.bf16 %v2058_v60, %v1986_v25  ;;  %v1103_v43 = vrot.slane %v1017_v40, 4  ;;  %v1047_v52 = vrot.slane %v2061_v6, 4 }
 0x2f1   : > { %v990_v2 = vpop.permute.xlu0 %989  ;;  %v1156_v14 = vrot.slane %v1025_v3, 4  ;;  %v1155_v17 = vrot.slane %v1024_v11, 4  ;;  %v1026_v22 = vmul.bf16 %v2087_v18, %v1933_v59  ;;  %v1020_v37 = vmul.bf16 %v2087_v18, %v1954_v9 }
 0x2f2   : > { %v2073_v5 = vsel %vm685_vm8, %v988_v63, %v990_v2  ;;  %v2076_v10 = vsel %vm685_vm8, %v990_v2, 0  ;;  %v1105_v39 = vrot.slane %v1019_v34, 4  ;;  %v1014_v50 = vmul.bf16 %v2087_v18, %v1943_v1 }
 0x2f3   : > { %1140 = vrot.lane.b32.xlu0 %v2076_v10, %s1746_s17  ;;  %1631 = vmatmul.mubr.msk.bf16.vlgmr.msra.gmra.mxu0 %vm928_vm10, %v1698_v53  ;;  %v1021_v21 = vmul.bf16 %v2073_v5, %v1996_v30  ;;  %v1027_v20 = vmul.bf16 %v2073_v5, %v1974_v19  ;;  %v1028_v26 = vmul.bf16 %v2076_v10, %v1949_v4  ;;  %v1157_v29 = vrot.slane %v1026_v22, 4 }
 0x2f4   : > { %1138 = vrot.lane.b32.xlu1 %v2073_v5, %s1746_s17  ;;  %v1022_v33 = vmul.bf16 %v2076_v10, %v1986_v25  ;;  %v1104_v30 = vrot.slane %v1018_v27, 4  ;;  %v1106_v41 = vrot.slane %v1020_v37, 4  ;;  %v1016_v46 = vmul.bf16 %v2076_v10, %v1967_v16 }
 0x2f5   : > { %v1159_v28 = vrot.slane %v1027_v20, 4  ;;  %v1161_v31 = vrot.slane %v1028_v26, 4  ;;  %v1108_v32 = vrot.slane %v1021_v21, 4  ;;  %v2108_v59 = vsel %vm459_vm0, %v1154_v23, %v1157_v29 }
 0x2f6   : > { %v1110_v36 = vrot.slane %v1022_v33, 4  ;;  %v1107_v44 = vsel %vm459_vm0, %v1103_v43, %v1106_v41  ;;  %v1015_v9 = vmul.bf16 %v2073_v5, %v1984_v24  ;;  %v1051_v54 = vrot.slane %v2073_v5, 4 }
 0x2f7   : > { %1167 = vrot.lane.b32.xlu0 %v1156_v14, %s1750_s21  ;;  %v2105_v19 = vsel %vm459_vm0, %v1155_v17, %v1159_v28  ;;  %v2111_v4 = vsel %vm459_vm0, %v1156_v14, %v1161_v31  ;;  %v1109_v35 = vsel %vm459_vm0, %v1104_v30, %v1108_v32  ;;  %v1013_v56 = vmul.bf16 %v2058_v60, %v1967_v16 }
 0x2f8   : > { %1165 = vrot.lane.b32.xlu1 %v1155_v17, %s1750_s21  ;;  %v1111_v25 = vsel %vm459_vm0, %v1105_v39, %v1110_v36  ;;  %v1012_v12 = vmul.bf16 %v2061_v6, %v1984_v24  ;;  %v1052_v58 = vsel %vm459_vm0, %v1047_v52, %v1051_v54  ;;  %v1049_v7 = vrot.slane %v2087_v18, 4 }
 0x2f9   : > { %v1048_v62 = vrot.slane %v2058_v60, 4  ;;  %v1053_v53 = vrot.slane %v2076_v10, 4  ;;  %v1011_v16 = vmul.bf16 %v2070_v51, %v1943_v1  ;;  %v1038_v2 = vmul.bf16 %v2087_v18, %v1904_v48 }
 0x2fa   : > { %v1050_v24 = vsel %vm459_vm0, %v1046_v8, %v1049_v7  ;;  %v1040_v1 = vmul.bf16 %v2076_v10, %v1906_v49  ;;  %v1039_v3 = vmul.bf16 %v2073_v5, %v1927_v57  ;;  %v1037_v11 = vmul.bf16 %v2058_v60, %v1906_v49 }
 0x2fb   : > { %1163 = vrot.lane.b32.xlu0 %v1154_v23, %s1750_s21  ;;  %v1054_v63 = vsel %vm459_vm0, %v1048_v62, %v1053_v53  ;;  %v1036_v14 = vmul.bf16 %v2061_v6, %v1927_v57  ;;  %v1035_v15 = vmul.bf16 %v2070_v51, %v1904_v48  ;;  %v1034_v49 = vmul.bf16 %v2076_v10, %v1936_v61 }
 0x2fc   : > { %1136 = vrot.lane.b32.xlu1 %v2087_v18, %s1746_s17  ;;  %v1033_v57 = vmul.bf16 %v2073_v5, %v1961_v13  ;;  %v1032_v48 = vmul.bf16 %v2087_v18, %v1921_v55  ;;  %v1031_v10 = vmul.bf16 %v2058_v60, %v1936_v61  ;;  %v1030_v17 = vmul.bf16 %v2061_v6, %v1961_v13 }
 0x2fd   : > { %v1029_v23 = vmul.bf16 %v2070_v51, %v1921_v55  ;;  %vm1300_vm8 = vcmask 719872  }
 0x2ff   : > { %1134 = vrot.lane.b32.xlu0 %v2058_v60, %s1746_s17 }
 0x300   : > { %1132 = vrot.lane.b32.xlu1 %v2061_v6, %s1746_s17 }
 0x303   : > { %1120 = vrot.lane.b32.xlu0 %v1109_v35, %s1752_s23 }
 0x304   : > { %1130 = vrot.lane.b32.xlu1 %v2070_v51, %s1746_s17 }
 0x307   : > { %920 = vperm.xlu0 %1671, %v912_v38  }
 0x308   : > { %1122 = vrot.lane.b32.xlu1 %v1111_v25, %s1752_s23 }
 0x30b   : > { %915 = vperm.xlu0 %1671, %v911_v42  }
 0x30c   : > { %1118 = vrot.lane.b32.xlu1 %v1107_v44, %s1752_s23 }
 0x30f   : > { %1089 = vrot.lane.b32.xlu0 %v1016_v46, %s1751_s22 }
 0x310   : > { %1087 = vrot.lane.b32.xlu1 %v1015_v9, %s1751_s22 }
 0x313   : > { %1116 = vrot.lane.b32.xlu0 %v1105_v39, %s1752_s23 }
 0x314   : > { %1114 = vrot.lane.b32.xlu1 %v1104_v30, %s1752_s23 }
 0x317   : > { %1112 = vrot.lane.b32.xlu0 %v1103_v43, %s1752_s23 }
 0x318   : > { %1085 = vrot.lane.b32.xlu1 %v1014_v50, %s1751_s22 }
 0x31b   : > { %1083 = vrot.lane.b32.xlu0 %v1013_v56, %s1751_s22 }
 0x31c   : > { %1081 = vrot.lane.b32.xlu1 %v1012_v12, %s1751_s22 }
 0x31f   : > { %1063 = vrot.lane.b32.xlu0 %v1052_v58, %s1753_s24 }
 0x320   : > { %1079 = vrot.lane.b32.xlu1 %v1011_v16, %s1751_s22 }
 0x323   : > { %1061 = vrot.lane.b32.xlu0 %v1050_v24, %s1753_s24 }
 0x324   : > { %1065 = vrot.lane.b32.xlu1 %v1054_v63, %s1753_s24 }
 0x327   : > { %1059 = vrot.lane.b32.xlu0 %v1048_v62, %s1753_s24 }
 0x328   : > { %1057 = vrot.lane.b32.xlu1 %v1047_v52, %s1753_s24 }
 0x32b   : > { %1235 = vrot.lane.b32.xlu0 %v1038_v2, %s1747_s18 }
 0x32c   : > { %1055 = vrot.lane.b32.xlu1 %v1046_v8, %s1753_s24 }
 0x32f   : > { %1239 = vrot.lane.b32.xlu0 %v1040_v1, %s1747_s18 }
 0x330   : > { %1237 = vrot.lane.b32.xlu1 %v1039_v3, %s1747_s18 }
 0x333   : > { %1233 = vrot.lane.b32.xlu0 %v1037_v11, %s1747_s18 }
 0x334   : > { %1231 = vrot.lane.b32.xlu1 %v1036_v14, %s1747_s18 }
 0x337   : > { %1213 = vrot.lane.b32.xlu0 %v1052_v58, %s1748_s19 }
 0x338   : > { %1229 = vrot.lane.b32.xlu1 %v1035_v15, %s1747_s18 }
 0x33b   : > { %1211 = vrot.lane.b32.xlu0 %v1050_v24, %s1748_s19 }
 0x33c   : > { %1215 = vrot.lane.b32.xlu1 %v1054_v63, %s1748_s19 }
 0x33f   : > { %1197 = vrot.lane.b32.xlu0 %v1034_v49, %s1749_s20  ;;  %v1010_v49 = vmul.bf16 %v2073_v5, %v1897_v47  ;;  %v1007_v5 = vmul.bf16 %v2070_v51, %v1894_v45 }
 0x340   : > { %1195 = vrot.lane.b32.xlu1 %v1033_v57, %s1749_s20 }
 0x343   : > { %1209 = vrot.lane.b32.xlu0 %v1048_v62, %s1748_s19 }
 0x344   : > { %1207 = vrot.lane.b32.xlu1 %v1047_v52, %s1748_s19 }
 0x347   : > { %1205 = vrot.lane.b32.xlu0 %v1046_v8, %s1748_s19 }
 0x348   : > { %1193 = vrot.lane.b32.xlu1 %v1032_v48, %s1749_s20  ;;  %v1009_v48 = vmul.bf16 %v2087_v18, %v1894_v45 }
 0x34b   : > { %1191 = vrot.lane.b32.xlu0 %v1031_v10, %s1749_s20 }
 0x34c   : > { %1189 = vrot.lane.b32.xlu1 %v1030_v17, %s1749_s20 }
 0x34f   : > { %1171 = vrot.lane.b32.xlu0 %v2105_v19, %s1750_s21 }
 0x350   : > { %1187 = vrot.lane.b32.xlu1 %v1029_v23, %s1749_s20  ;;  %v1008_v23 = vmul.bf16 %v2061_v6, %v1897_v47 }
 0x353   : > { %1169 = vrot.lane.b32.xlu0 %v2108_v59, %s1750_s21 }
 0x354   : > { %1173 = vrot.lane.b32.xlu1 %v2111_v4, %s1750_s21  ;;  %s1755_s21 = smov 6  }
 0x365   : > { %v1141_v61 = vpop.permute.xlu0 %1140 }
 0x366   : > { %v1139_v13 = vpop.permute.xlu1 %1138 }
 0x367   : > { %v1145_v60 = vsel %vm812_vm5, %v1139_v13, %v1141_v61 }
 0x369   : > { %v1168_v21 = vpop.permute.xlu0 %1167 }
 0x36a   : > { %v1166_v20 = vpop.permute.xlu1 %1165 }
 0x36b   : > { %v1176_v22 = vsel %vm827_vm4, %v1166_v20, %v1168_v21 }
 0x36c   : > { %v1269_v55 = vsel %vm459_vm0, %v1145_v60, %v1176_v22 }
 0x36d   : > { %1310 = vmatprep.subr.bf16.mxu1 %v1269_v55  ;;  %v1164_v26 = vpop.permute.xlu0 %1163 }
 0x36e   : > { %v1175_v27 = vsel %vm827_vm4, %v1164_v26, %v1166_v20  ;;  %v1137_v28 = vpop.permute.xlu1 %1136 }
 0x36f   : > { %v1144_v29 = vsel %vm812_vm5, %v1137_v28, %v1139_v13 }
 0x370   : > { %v1265_v31 = vsel %vm459_vm0, %v1144_v29, %v1175_v27 }
 0x371   : > { %1311 = vmatpush1.bf16.msra.mxu1 %v1265_v31  ;;  %v1135_v32 = vpop.permute.xlu0 %1134 }
 0x372   : > { %v1133_v19 = vpop.permute.xlu1 %1132 }
 0x373   : > { %v1143_v59 = vsel %vm812_vm5, %v1133_v19, %v1135_v32 }
 0x374   : > { %1312 = vmatprep.subr.bf16.mxu1 %v1143_v59 }
 0x375   : > { %v1121_v30 = vpop.permute.xlu0 %1120 }
 0x376   : > { %v1131_v4 = vpop.permute.xlu1 %1130 }
 0x377   : > { %v1142_v33 = vsel %vm812_vm5, %v1131_v4, %v1133_v19 }
 0x378   : > { %1313 = vmatpush1.bf16.msra.mxu1 %v1142_v33 }
 0x37a   : > { %v1123_v34 = vpop.permute.xlu1 %1122 }
 0x37b   : > { %v1127_v35 = vsel %vm803_vm6, %v1121_v30, %v1123_v34 }
 0x37c   : > { %1314 = vmatprep.subr.bf16.mxu1 %v1127_v35 }
 0x37e   : > { %v1119_v36 = vpop.permute.xlu1 %1118 }
 0x37f   : > { %v1126_v37 = vsel %vm803_vm6, %v1119_v36, %v1121_v30 }
 0x380   : > { %1315 = vmatpush1.bf16.msra.mxu1 %v1126_v37 }
 0x382   : > { %v1088_v38 = vpop.permute.xlu1 %1087  ;;  %v2233_v39 = vpop.permute.xlu0 %920 }
 0x386   : > { %v1115_v40 = vpop.permute.xlu1 %1114  ;;  %v2235_v25 = vpop.permute.xlu0 %915 }
 0x38a   : > { %v1086_v41 = vpop.permute.xlu1 %1085  ;;  %v1090_v42 = vpop.permute.xlu0 %1089 }
 0x38b   : > { %v1094_v46 = vsel %vm788_vm7, %v1088_v38, %v1090_v42  ;;  %v1093_v56 = vsel %vm788_vm7, %v1086_v41, %v1088_v38 }
 0x38e   : > { %v1082_v43 = vpop.permute.xlu1 %1081  ;;  %v1117_v44 = vpop.permute.xlu0 %1116 }
 0x38f   : > { %v1125_v9 = vsel %vm803_vm6, %v1115_v40, %v1117_v44 }
 0x390   : > { %v1261_v50 = vsel %vm459_vm0, %v1094_v46, %v1125_v9 }
 0x391   : > { %1316 = vmatprep.subr.bf16.mxu1 %v1261_v50 }
 0x392   : > { %v1080_v52 = vpop.permute.xlu1 %1079  ;;  %v1113_v54 = vpop.permute.xlu0 %1112 }
 0x393   : > { %v1124_v12 = vsel %vm803_vm6, %v1113_v54, %v1115_v40  ;;  %v1091_v53 = vsel %vm788_vm7, %v1080_v52, %v1082_v43 }
 0x394   : > { %v1257_v58 = vsel %vm459_vm0, %v1093_v56, %v1124_v12 }
 0x395   : > { %1317 = vmatpush1.bf16.msra.mxu1 %v1257_v58 }
 0x396   : > { %v1066_v8 = vpop.permute.xlu1 %1065  ;;  %v1084_v7 = vpop.permute.xlu0 %1083 }
 0x397   : > { %v1092_v62 = vsel %vm788_vm7, %v1082_v43, %v1084_v7  ;;  %v2296_v7 = vld [vmem:[%s2385_s9 + $0x8] sm:$0xf] }
 0x398   : > { %1318 = vmatprep.subr.bf16.mxu1 %v1092_v62 }
 0x399   : > { %1319 = vmatpush1.bf16.msra.mxu1 %v1091_v53 }
 0x39a   : > { %v1058_v16 = vpop.permute.xlu1 %1057  ;;  %v1064_v24 = vpop.permute.xlu0 %1063 }
 0x39b   : > { %v1070_v63 = vsel %vm773_vm9, %v1064_v24, %v1066_v8 }
 0x39c   : > { %1320 = vmatprep.subr.bf16.mxu1 %v1070_v63 }
 0x39e   : > { %v1056_v2 = vpop.permute.xlu1 %1055  ;;  %v1062_v1 = vpop.permute.xlu0 %1061 }
 0x39f   : > { %v1069_v3 = vsel %vm773_vm9, %v1062_v1, %v1064_v24  ;;  %v1067_v11 = vsel %vm773_vm9, %v1056_v2, %v1058_v16  ;;  %v2305_v2 = vld [vmem:[%s2385_s9] sm:$0xff]  ;;  %v1754_v1 = vmov 4  }
 0x3a0   : > { %1321 = vmatpush1.bf16.msra.mxu1 %v1069_v3  ;;  %v1249_v17 = vsel %vm459_vm0, %v1009_v48, %v1067_v11  ;;  %1673 = vset.pattern.permute.xlu1 %v1754_v1  ;;  %v1699_v3 = vld [vmem:[%s2383_s7] ss:$8 sps:$4 sm:$0x3f]   ;;  %v1701_v11 = vld [vmem:[%s2383_s7 + $0x4] ss:$8 sps:$4 sm:$0x3f]  }
 0x3a1   : > { %1674 = vset.pattern.permute.xlu0 %v1754_v1  ;;  %1635 = vmatprep.mubr.msk.bf16.mxu1 %vm1300_vm8, %v1701_v11 }
 0x3a2   : > { %v1238_v14 = vpop.permute.xlu1 %1237  ;;  %v1060_v15 = vpop.permute.xlu0 %1059 }
 0x3a3   : > { %v1068_v57 = vsel %vm773_vm9, %v1058_v16, %v1060_v15 }
 0x3a4   : > { %v1253_v10 = vsel %vm459_vm0, %v1010_v49, %v1068_v57 }
 0x3a5   : > { %1322 = vmatprep.subr.bf16.mxu1 %v1253_v10 }
 0x3a6   : > { %v1232_v61 = vpop.permute.xlu1 %1231  ;;  %v1236_v13 = vpop.permute.xlu0 %1235  ;;  %1323 = vmatpush1.bf16.msra.mxu1 %v1249_v17 }
 0x3a7   : > { %1324 = vmatprep.subr.bf16.mxu1 %v1008_v23  ;;  %v1243_v60 = vsel %vm866_vm14, %v1236_v13, %v1238_v14 }
 0x3a8   : > { %v1305_v22 = vsel %vm459_vm0, %v1243_v60, 0 }
 0x3aa   : > { %v1230_v21 = vpop.permute.xlu1 %1229  ;;  %v1240_v20 = vpop.permute.xlu0 %1239  ;;  %1325 = vmatpush1.bf16.msra.mxu1 %v1007_v5 }
 0x3ab   : > { %v1244_v18 = vsel %vm866_vm14, %v1238_v14, %v1240_v20  ;;  %v1241_v26 = vsel %vm866_vm14, %v1230_v21, %v1232_v61 }
 0x3ac   : > { %1634 = vmatprep.subr.msk.bf16.mxu1 %vm459_vm0, %v1244_v18 }
 0x3ae   : > { %v1216_v55 = vpop.permute.xlu1 %1215  ;;  %v1234_v47 = vpop.permute.xlu0 %1233  ;;  %1331 = vmatpush2.bf16.msra.mxu1 %v1305_v22 }
 0x3af   : > { %v1242_v6 = vsel %vm866_vm14, %v1232_v61, %v1234_v47 }
 0x3b0   : > { %1332 = vmatprep.subr.bf16.mxu1 %v1242_v6 }
 0x3b2   : > { %v1196_v45 = vpop.permute.xlu1 %1195  ;;  %v1214_v51 = vpop.permute.xlu0 %1213  ;;  %1333 = vmatpush2.bf16.msra.mxu1 %v1241_v26 }
 0x3b3   : > { %v972_v27 = vpop.f32.mrf.mxu0  ;;  %v1220_v28 = vsel %vm854_vm2, %v1214_v51, %v1216_v55 }
 0x3b4   : > { %1334 = vmatprep.subr.bf16.mxu1 %v1220_v28  ;;  %v2267_v31 = vadd.f32 %v972_v27, %v2235_v25 }
 0x3b5   : > { %v974_v29 = vpop.f32.mrf.mxu0 }
 0x3b6   : > { %v2270_v32 = vadd.f32 %v974_v29, %v2235_v25  ;;  %v1208_v19 = vpop.permute.xlu1 %1207  ;;  %v1212_v59 = vpop.permute.xlu0 %1211 }
 0x3b7   : > { %v1219_v4 = vsel %vm854_vm2, %v1212_v59, %v1214_v51  ;;  %v976_v33 = vpop.f32.mrf.mxu0 }
 0x3b8   : > { %v2274_v30 = vadd.f32 %v976_v33, %v2233_v39  ;;  %1335 = vmatpush2.bf16.msra.mxu1 %v1219_v4  ;;  %v1355_v34 = vadd.f32 %v2270_v32, %v2267_v31 }
 0x3b9   : > { %v978_v35 = vpop.f32.mrf.mxu0 }
 0x3ba   : > { %v2279_v36 = vadd.f32 %v978_v35, %v2233_v39  ;;  %v1194_v37 = vpop.permute.xlu1 %1193  ;;  %v1198_v38 = vpop.permute.xlu0 %1197  ;;  %1356 = vadd.xlane.f32.xlu1 %v1355_v34  ;;  %v1358_v40 = vsel %vm459_vm0, %v2274_v30, 0.0 }
 0x3bb   : > { %v1202_v44 = vsel %vm842_vm1, %v1196_v45, %v1198_v38  ;;  %v1201_v50 = vsel %vm842_vm1, %v1194_v37, %v1196_v45  ;;  %v1756_v38 = vmov 2  }
 0x3bc   : > { %v1359_v25 = vsel %vm459_vm0, %v2279_v36, 0.0 }
 0x3bd   : > { %v1360_v41 = vadd.f32 %v1359_v25, %v1358_v40  ;;  %v1757_v40 = vmov 5   ;;  %v1758_v25 = vmov 3  }
 0x3be   : > { %v1190_v42 = vpop.permute.xlu1 %1189  ;;  %v1210_v43 = vpop.permute.xlu0 %1209 }
 0x3bf   : > { %v1218_v46 = vsel %vm854_vm2, %v1208_v19, %v1210_v43  ;;  %1361 = vadd.xlane.f32.xlu0 %v1360_v41  ;;  %v1759_v41 = vmov 6   ;;  %v1493_v43 = vsub.f32 1.0, %v2296_v7 }
 0x3c0   : > { %v1277_v39 = vsel %vm459_vm0, %v1202_v44, %v1218_v46  ;;  %v1279_v44 = vld [vmem:[%s2384_s8] sm:$0xff]  ;;  %v1760_v46 = vmov 7  }
 0x3c1   : > { %1336 = vmatprep.subr.bf16.mxu1 %v1277_v39 }
 0x3c2   : > { %v1206_v9 = vpop.permute.xlu0 %1205  ;;  %v1188_v54 = vpop.permute.xlu1 %1187 }
 0x3c3   : > { %v1217_v52 = vsel %vm854_vm2, %v1206_v9, %v1208_v19  ;;  %v1199_v8 = vsel %vm842_vm1, %v1188_v54, %v1190_v42 }
 0x3c4   : > { %v1273_v56 = vsel %vm459_vm0, %v1201_v50, %v1217_v52 }
 0x3c5   : > { %1337 = vmatpush2.bf16.msra.mxu1 %v1273_v56 }
 0x3c6   : > { %v1192_v12 = vpop.permute.xlu0 %1191  ;;  %v1174_v62 = vpop.permute.xlu1 %1173 }
 0x3c7   : > { %v1200_v58 = vsel %vm842_vm1, %v1190_v42, %v1192_v12  ;;  %v1492_v42 = vsub.f32 1.0, %v2305_v2  ;;  %v1280_v12 = vld [vmem:[%s2384_s8 + $0x8] sm:$0xf] }
 0x3c8   : > { %1338 = vmatprep.subr.bf16.mxu1 %v1200_v58 }
 0x3c9   : > { %1339 = vmatpush2.bf16.msra.mxu1 %v1199_v8 }
 0x3ca   : > { %v1172_v53 = vpop.permute.xlu0 %1171 }
 0x3cb   : > { %v1178_v16 = vsel %vm827_vm4, %v1172_v53, %v1174_v62  ;;  %1422 = vrot.lane.b32.xlu1 %v2296_v7, %s1753_s24 }
 0x3cc   : > { %1340 = vmatprep.subr.bf16.mxu1 %v1178_v16 }
 0x3ce   : > { %v1170_v24 = vpop.permute.xlu0 %1169 }
 0x3cf   : > { %v1177_v63 = vsel %vm827_vm4, %v1170_v24, %v1172_v53 }
 0x3d0   : > { %1341 = vmatpush2.bf16.msra.mxu1 %v1177_v63 }
 0x3d3   : > { %1343 = vmatmul.mubr.bf16.vlgmr.msra.gmra.mxu1 %v1699_v3 }
 0x3d5   : > { %1420 = vrot.lane.b32.xlu0 %v2305_v2, %s1753_s24 }
 0x443   : > { %v1357_v14 = vpop.xlane.xlu1 %1356 }
 0x444   : > { %v1364_v15 = vmul.f32 0.00390625, %v1357_v14 }
 0x446   : > { %v2316_v49 = vsub.f32 %v2267_v31, %v1364_v15  ;;  %v2319_v57 = vsub.f32 %v2270_v32, %v1364_v15  ;;  %v1418_v21 = vmul.f32 %v1364_v15, %v2305_v2 }
 0x447   : > { %v1423_v13 = vpop.permute.xlu1 %1422 }
 0x448   : > { %v1362_v48 = vpop.xlane.xlu0 %1361  ;;  %v1370_v10 = vmul.f32 %v2316_v49, %v2316_v49  ;;  %v1371_v17 = vmul.f32 %v2319_v57, %v2319_v57 }
 0x449   : > { %v1365_v23 = vmul.f32 0.00390625, %v1362_v48 }
 0x44a   : > { %v1374_v61 = vadd.f32 %v1371_v17, %v1370_v10 }
 0x44b   : > { %v2326_v5 = vsub.f32 %v2274_v30, %v1365_v23  ;;  %v2329_v60 = vsub.f32 %v2279_v36, %v1365_v23  ;;  %v1419_v20 = vmul.f32 %v1365_v23, %v2296_v7 }
 0x44c   : > { %v1421_v18 = vpop.permute.xlu0 %1420  ;;  %1375 = vadd.xlane.f32.xlu1 %v1374_v61 }
 0x44d   : > { %v1426_v22 = vadd.f32 %v1421_v18, %v1418_v21  ;;  %v1427_v55 = vadd.f32 %v1423_v13, %v1419_v20  ;;  %v1372_v47 = vmul.f32 %v2326_v5, %v2326_v5  ;;  %v1373_v6 = vmul.f32 %v2329_v60, %v2329_v60 }
 0x44f   : > { %v1428_v26 = vsub.f32 0.0, %v1426_v22  ;;  %v1429_v45 = vsub.f32 0.0, %v1427_v55  ;;  %v1377_v51 = vsel %vm459_vm0, %v1372_v47, 0.0  ;;  %v1378_v27 = vsel %vm459_vm0, %v1373_v6, 0.0 }
 0x450   : > { %v1379_v28 = vadd.f32 %v1378_v27, %v1377_v51 }
 0x451   : > { %v1430_v29 = vmul.f32 1.442695, %v1428_v26  ;;  %v1432_v19 = vmul.f32 1.442695, %v1429_v45 }
 0x452   : > { %1380 = vadd.xlane.f32.xlu0 %v1379_v28 }
 0x453   : > { %1702 = vpow2.f32 %v1430_v29 }
 0x454   : > { %1704 = vpow2.f32 %v1432_v19 }
 0x460   : > { %v1703_v59 = vpop.eup %1702 }
 0x461   : > { %v1705_v4 = vpop.eup %1704  ;;  %v1434_v33 = vadd.f32 1.0, %v1703_v59 }
 0x462   : > { %v1435_v34 = vadd.f32 1.0, %v1705_v4 }
 0x463   : > { %1706 = vrcp.f32 %v1434_v33 }
 0x464   : > { %1708 = vrcp.f32 %v1435_v34 }
 0x470   : > { %v1707_v35 = vpop.eup %1706 }
 0x471   : > { %v1709_v37 = vpop.eup %1708  ;;  %1484 = vrot.lane.b32.xlu0 %v1707_v35, %s1755_s21 }
 0x472   : > { %1486 = vrot.lane.b32.xlu1 %v1709_v37, %s1755_s21 }
 0x475   : > { %1399 = vperm.xlu0 %1674, %v2296_v7  }
 0x476   : > { %1394 = vperm.xlu1 %1673, %v2305_v2  }
 0x479   : > { %1676 = vset.pattern.permute.xlu0 %v1756_v38 }
 0x47a   : > { %1675 = vset.pattern.permute.xlu1 %v1757_v40  ;;  %1439 = vperm.xlu0 %1676, %v2305_v2  }
 0x47b   : > { %1407 = vperm.xlu1 %1675, %v2305_v2  }
 0x47e   : > { %1679 = vset.pattern.permute.xlu0 %v1758_v25 }
 0x47f   : > { %1411 = vperm.xlu1 %1675, %v2296_v7   ;;  %1455 = vperm.xlu0 %1679, %v2296_v7  }
 0x483   : > { %1677 = vset.pattern.permute.xlu1 %v1756_v38  ;;  %1682 = vset.pattern.permute.xlu0 %v1759_v41 }
 0x484   : > { %1443 = vperm.xlu1 %1677, %v2296_v7  }
 0x488   : > { %1678 = vset.pattern.permute.xlu1 %v1758_v25 }
 0x489   : > { %1451 = vperm.xlu1 %1678, %v2305_v2  }
 0x48d   : > { %1680 = vset.pattern.permute.xlu1 %v1759_v41 }
 0x48e   : > { %1496 = vperm.xlu1 %1680, %v1492_v42  }
 0x492   : > { %1501 = vperm.xlu1 %1680, %v1493_v43  }
 0x496   : > { %1681 = vset.pattern.permute.xlu1 %v1738_v0 }
 0x497   : > { %1283 = vperm.xlu1 %1681, %v1279_v44  }
 0x49b   : > { %1684 = vset.pattern.permute.xlu1 %v1760_v46 }
 0x49c   : > { %1527 = vperm.xlu1 %1684, %v2305_v2  }
 0x4a0   : > { %1685 = vset.pattern.permute.xlu1 %v1759_v41 }
 0x4d5   : > { %v1376_v9 = vpop.xlane.xlu1 %1375 }
 0x4d6   : > { %v1382_v8 = vmul.f32 0.00390625, %v1376_v9 }
 0x4d8   : > { %v1384_v53 = vadd.f32 1e-05, %v1382_v8 }
 0x4db   : > { %v1381_v39 = vpop.xlane.xlu0 %1380 }
 0x4dc   : > { %v1383_v58 = vmul.f32 0.00390625, %v1381_v39 }
 0x4de   : > { %v1385_v62 = vadd.f32 1e-05, %v1383_v58 }
 0x4e0   : > { %1710 = vrsqrt.f32 %v1385_v62 }
 0x4e1   : > { %1712 = vrsqrt.f32 %v1384_v53 }
 0x4e3   : > { %v1485_v50 = vpop.permute.xlu0 %1484 }
 0x4e4   : > { %v1490_v52 = vmul.f32 %v1485_v50, %v2305_v2  ;;  %v1487_v54 = vpop.permute.xlu1 %1486  ;;  %v1344_v50 = vpop.f32.mrf.mxu1 }
 0x4e5   : > { %v1491_v56 = vmul.f32 %v1487_v54, %v2296_v7 }
 0x4e6   : > { %1510 = vperm.xlu0 %1682, %v1490_v52   ;;  %v1346_v8 = vpop.f32.mrf.mxu1 }
 0x4e7   : > { %1515 = vperm.xlu1 %1685, %v1491_v56  }
 0x4ea   : > { %1683 = vset.pattern.permute.xlu0 %v1738_v0 }
 0x4eb   : > { %1686 = vset.pattern.permute.xlu1 %v1760_v46  ;;  %1288 = vperm.xlu0 %1683, %v1280_v12  }
 0x4ec   : > { %1531 = vperm.xlu1 %1686, %v2296_v7  }
 0x4ed   : > { %v1711_v63 = vpop.eup %1710 }
 0x4ee   : > { %v1713_v1 = vpop.eup %1712  ;;  %v1390_v3 = vmul.f32 %v1711_v63, %v2326_v5  ;;  %v1391_v0 = vmul.f32 %v1711_v63, %v2329_v60 }
 0x4ef   : > { %1687 = vset.pattern.permute.xlu0 %v1760_v46  ;;  %v1388_v14 = vmul.f32 %v1713_v1, %v2316_v49  ;;  %v1389_v15 = vmul.f32 %v1713_v1, %v2319_v57 }
 0x4f0   : > { %v1400_v11 = vpop.permute.xlu0 %1399 }
 0x4f1   : > { %v1395_v16 = vpop.permute.xlu1 %1394  ;;  %v1404_v7 = vmul.f32 %v1400_v11, %v1390_v3  ;;  %v1405_v13 = vmul.f32 %v1400_v11, %v1391_v0 }
 0x4f2   : > { %v1402_v10 = vmul.f32 %v1395_v16, %v1388_v14  ;;  %v1403_v23 = vmul.f32 %v1395_v16, %v1389_v15 }
 0x4f5   : > { %v1440_v17 = vpop.permute.xlu0 %1439 }
 0x4f6   : > { %v1408_v24 = vpop.permute.xlu1 %1407 }
 0x4f7   : > { %v1414_v21 = vadd.f32 %v1408_v24, %v1402_v10  ;;  %v1415_v20 = vadd.f32 %v1408_v24, %v1403_v23  ;;  %v1348_v24 = vpop.f32.mrf.mxu1 }
 0x4f9   : > { %v1446_v47 = vmul.f32 %v1440_v17, %v1414_v21  ;;  %v1447_v60 = vmul.f32 %v1440_v17, %v1415_v20  ;;  %v1350_v17 = vpop.f32.mrf.mxu1 }
 0x4fa   : > { %v1412_v2 = vpop.permute.xlu1 %1411  ;;  %v1456_v55 = vpop.permute.xlu0 %1455 }
 0x4fb   : > { %v1416_v61 = vadd.f32 %v1412_v2, %v1404_v7  ;;  %v1417_v22 = vadd.f32 %v1412_v2, %v1405_v13 }
 0x4ff   : > { %v1444_v48 = vpop.permute.xlu1 %1443 }
 0x500   : > { %v1448_v18 = vmul.f32 %v1444_v48, %v1416_v61  ;;  %v1449_v6 = vmul.f32 %v1444_v48, %v1417_v22 }
 0x502   : > { %v1460_v26 = vadd.f32 %v1456_v55, %v1448_v18  ;;  %v1461_v51 = vadd.f32 %v1456_v55, %v1449_v6 }
 0x504   : > { %v1452_v5 = vpop.permute.xlu1 %1451  ;;  %v1464_v57 = vsub.f32 0.0, %v1460_v26  ;;  %v1465_v29 = vsub.f32 0.0, %v1461_v51 }
 0x505   : > { %v1458_v49 = vadd.f32 %v1452_v5, %v1446_v47  ;;  %v1459_v45 = vadd.f32 %v1452_v5, %v1447_v60 }
 0x506   : > { %v1470_v19 = vmul.f32 1.442695, %v1464_v57  ;;  %v1472_v33 = vmul.f32 1.442695, %v1465_v29 }
 0x507   : > { %v1462_v27 = vsub.f32 0.0, %v1458_v49  ;;  %v1463_v28 = vsub.f32 0.0, %v1459_v45 }
 0x508   : > { %1714 = vpow2.f32 %v1470_v19 }
 0x509   : > { %v1466_v59 = vmul.f32 1.442695, %v1462_v27  ;;  %v1468_v4 = vmul.f32 1.442695, %v1463_v28  ;;  %v1497_v42 = vpop.permute.xlu1 %1496 }
 0x50b   : > { %1716 = vpow2.f32 %v1466_v59 }
 0x50c   : > { %1718 = vpow2.f32 %v1468_v4 }
 0x50d   : > { %1720 = vpow2.f32 %v1472_v33  ;;  %v1502_v44 = vpop.permute.xlu1 %1501 }
 0x512   : > { %v1284_v46 = vpop.permute.xlu1 %1283 }
 0x513   : > { %v1345_v48 = vadd.f32 %v1344_v50, %v1284_v46  ;;  %v1347_v10 = vadd.f32 %v1346_v8, %v1284_v46 }
 0x515   : > { %v1715_v34 = vpop.eup %1714 }
 0x516   : > { %v1476_v40 = vadd.f32 1.0, %v1715_v34 }
 0x517   : > { %v1528_v52 = vpop.permute.xlu1 %1527 }
 0x518   : > { %v1717_v35 = vpop.eup %1716  ;;  %1722 = vrcp.f32 %v1476_v40 }
 0x519   : > { %v1719_v37 = vpop.eup %1718  ;;  %v1474_v25 = vadd.f32 1.0, %v1717_v35 }
 0x51a   : > { %v1721_v38 = vpop.eup %1720  ;;  %v1475_v41 = vadd.f32 1.0, %v1719_v37 }
 0x51b   : > { %v1477_v43 = vadd.f32 1.0, %v1721_v38  ;;  %1724 = vrcp.f32 %v1474_v25 }
 0x51c   : > { %1726 = vrcp.f32 %v1475_v41 }
 0x51d   : > { %1728 = vrcp.f32 %v1477_v43 }
 0x525   : > { %v1723_v39 = vpop.eup %1722 }
 0x526   : > { %v1506_v62 = vmul.f32 %v1723_v39, %v1502_v44 }
 0x528   : > { %v1725_v9 = vpop.eup %1724 }
 0x529   : > { %v1727_v54 = vpop.eup %1726  ;;  %v1504_v12 = vmul.f32 %v1725_v9, %v1497_v42 }
 0x52a   : > { %v1729_v56 = vpop.eup %1728  ;;  %v1505_v58 = vmul.f32 %v1727_v54, %v1497_v42 }
 0x52b   : > { %v1507_v53 = vmul.f32 %v1729_v56, %v1502_v44 }
 0x561   : > { %v1511_v16 = vpop.permute.xlu0 %1510 }
 0x562   : > { %v1518_v63 = vadd.f32 %v1511_v16, %v1504_v12  ;;  %v1519_v2 = vadd.f32 %v1511_v16, %v1505_v58  ;;  %v1516_v1 = vpop.permute.xlu1 %1515 }
 0x563   : > { %v1520_v3 = vadd.f32 %v1516_v1, %v1506_v62  ;;  %v1521_v11 = vadd.f32 %v1516_v1, %v1507_v53 }
 0x564   : > { %v1522_v0 = vmul.f32 %v1518_v63, %v2267_v31  ;;  %v1523_v14 = vmul.f32 %v1519_v2, %v2270_v32 }
 0x565   : > { %v1524_v7 = vmul.f32 %v1520_v3, %v2274_v30  ;;  %v1525_v15 = vmul.f32 %v1521_v11, %v2279_v36 }
 0x566   : > { %v1534_v23 = vmul.f32 %v1528_v52, %v1522_v0  ;;  %v1535_v61 = vmul.f32 %v1528_v52, %v1523_v14  ;;  %v1289_v13 = vpop.permute.xlu0 %1288 }
 0x567   : > { %v1349_v21 = vadd.f32 %v1348_v24, %v1289_v13  ;;  %v1351_v20 = vadd.f32 %v1350_v17, %v1289_v13  ;;  %v1532_v31 = vpop.permute.xlu1 %1531 }
 0x568   : > { %v1538_v18 = vadd.f32 %v1534_v23, %v1345_v48  ;;  %v1539_v32 = vadd.f32 %v1535_v61, %v1347_v10  ;;  %v1536_v22 = vmul.f32 %v1532_v31, %v1524_v7  ;;  %v1537_v55 = vmul.f32 %v1532_v31, %v1525_v15 }
 0x56a   : > { %v1540_v30 = vadd.f32 %v1536_v22, %v1349_v21  ;;  %v1541_v5 = vadd.f32 %v1537_v55, %v1351_v20  ;;  %1542 = vst [vmem:[%s359_s29] sm:$0xff] %v1538_v18  ;;  %1543 = vst [vmem:[%s359_s29 + $0x8] sm:$0xff] %v1539_v32 }
 0x56c   : > { %1544 = vst [vmem:[%s359_s29 + $0x10] sm:$0xf] %v1540_v30  ;;  %1545 = vst [vmem:[%s359_s29 + $0x18] sm:$0xf] %v1541_v5 }
 0x56d PF: > { %s20_s13 = sadd.s32 1, %s1736_s13  }
 0x56e   : > { %p17_p4 = scmp.ge.s32.totalorder %s20_s13, 4  }
 0x570   :  { %19 = sbr.rel (!%p17_p4) target bundleno = 1 (0x1), region = 90 }

</bundles_post_ra>
